<compile_context>
chip_gen: v6e
topology: v6e:2x2x1
jax: 0.10.0
libtpu: 0.0.40
codegen_flags: <defaults>
</compile_context>

<pallas_src>
import math

import jax
import jax.numpy as jnp
from jax.experimental import pallas as pl
from jax.experimental.pallas import tpu as pltpu


# ---------------------------------------------------------------------------
# Pallas kernel: full encoder stack.  grid = (batch, layer, d_ff tile).
# ---------------------------------------------------------------------------
def _make_encoder_stack_kernel(n_heads, d_feature, eps=1e-5):
    H, F = n_heads, d_feature
    HF = H * F

    def kernel(
        x_ref,                       # (1, S, D)    f32
        wqkv_ref, bqkv_ref,          # (1, D, 3HF)  bf16 , (1, 1, 3HF) f32
        w0_ref, b0_ref,              # (1, HF, D)   bf16 , (1, 1, D)   f32
        g1_ref, be1_ref,             # (1, 1, D)    f32
        w1_ref, b1_ref,              # (1, D, tff)  bf16 , (1, 1, tff) f32
        w2_ref, b2_ref,              # (1, tff, D)  bf16 , (1, 1, D)   f32
        g2_ref, be2_ref,             # (1, 1, D)    f32
        out_ref,                     # (1, S, D)    f32  (resident carry)
        x1_ref,                      # VMEM (S, D)  f32  (x + norm1 carry)
        ffacc_ref,                   # VMEM (S, D)  f32  (FFN accumulator)
    ):
        layer = pl.program_id(1)
        ftile = pl.program_id(2)
        last_ftile = pl.num_programs(2) - 1

        # Seed the resident activation carry with the input at layer 0.
        @pl.when(jnp.logical_and(layer == 0, ftile == 0))
        def _():
            out_ref[...] = x_ref[...]

        # ---- attention + LayerNorm1 + residual: once per layer (ftile 0) ----
        @pl.when(ftile == 0)
        def _():
            x = out_ref[0]                                       # (S, D) f32
            S, D = x.shape
            x_bf = x.astype(jnp.bfloat16)

            # Fused QKV projection; 1/sqrt(d_k) already folded into Q columns.
            qkv = jnp.dot(x_bf, wqkv_ref[0],
                          preferred_element_type=jnp.float32) + bqkv_ref[0]

            # Per-head attention with the reference quirk: scores = K @ Q^T.
            # Each head's output is folded into the W_0 projection immediately,
            # so only the (S, D) accumulator is carried (no concat).
            attn = jnp.zeros((S, D), jnp.float32)
            for h in range(H):
                q0, k0, v0 = h * F, HF + h * F, 2 * HF + h * F
                qh = qkv[:, q0:q0 + F].astype(jnp.bfloat16)      # (S, F)
                kh = qkv[:, k0:k0 + F].astype(jnp.bfloat16)
                vh = qkv[:, v0:v0 + F].astype(jnp.bfloat16)
                # contract feature axes directly (no qh.T materialized)
                s = jax.lax.dot_general(
                    kh, qh, (((1,), (1,)), ((), ())),
                    preferred_element_type=jnp.float32)          # (S_k, S_q)
                s = s - jnp.max(s, axis=-1, keepdims=True)
                p = jnp.exp(s)
                p = p * pl.reciprocal(jnp.sum(p, axis=-1, keepdims=True),
                                      approx=True)
                oh = jnp.dot(p.astype(jnp.bfloat16), vh,
                             preferred_element_type=jnp.float32)  # (S, F)
                attn = attn + jnp.dot(
                    oh.astype(jnp.bfloat16), w0_ref[0, h * F:(h + 1) * F, :],
                    preferred_element_type=jnp.float32)           # (S, D)
            attn = attn + b0_ref[0]

            # LayerNorm 1 + residual (dropout == identity in eval mode).
            mu1 = jnp.mean(attn, axis=-1, keepdims=True)
            t1 = attn - mu1
            var1 = jnp.mean(t1 * t1, axis=-1, keepdims=True)
            norm1 = t1 * jax.lax.rsqrt(var1 + eps) * g1_ref[0] + be1_ref[0]

            x1_ref[...] = x + norm1
            ffacc_ref[...] = jnp.zeros_like(ffacc_ref)

        # ---- feed-forward: one (D, tff) / (tff, D) weight tile per step ----
        x1_bf = x1_ref[...].astype(jnp.bfloat16)
        h1 = jnp.dot(x1_bf, w1_ref[0],
                     preferred_element_type=jnp.float32) + b1_ref[0]  # (S, tff)
        h1 = jnp.maximum(h1, 0.1 * h1)                                # LeakyReLU
        ffacc_ref[...] += jnp.dot(h1.astype(jnp.bfloat16), w2_ref[0],
                                  preferred_element_type=jnp.float32)

        # ---- LayerNorm 2 + residual: once per layer (last d_ff tile) ----
        @pl.when(ftile == last_ftile)
        def _():
            ff = ffacc_ref[...] + b2_ref[0]
            mu2 = jnp.mean(ff, axis=-1, keepdims=True)
            t2 = ff - mu2
            var2 = jnp.mean(t2 * t2, axis=-1, keepdims=True)
            norm2 = t2 * jax.lax.rsqrt(var2 + eps) * g2_ref[0] + be2_ref[0]
            out_ref[0] = (x1_ref[...] + norm2).astype(out_ref.dtype)

    return kernel


_PARAM_ORDER = ("wqkv", "bqkv", "w0", "b0", "g1", "be1",
                "w1", "b1", "w2", "b2", "g2", "be2")


def _pick_ff_tile(d_ff):
    for t in (512, 256, 128):
        if d_ff >= t and d_ff % t == 0:
            return t
    return d_ff


def _vmem_limit_bytes(S, D, HF, d_ff, tff, n_heads):
    """Rough VMEM budget: double-buffered blocks + scratch + live intermediates."""
    f4, b2 = 4, 2
    F = HF // n_heads
    blocks = 2 * (2 * S * D * f4                       # x block + out carry
                  + D * 3 * HF * b2 + 3 * HF * f4      # wqkv / bqkv
                  + HF * D * b2 + D * f4               # w0 / b0
                  + D * tff * b2 + tff * f4            # w1 / b1 tile
                  + tff * D * b2 + D * f4              # w2 tile / b2
                  + 4 * D * f4)                        # g1, be1, g2, be2
    scratch = 2 * S * D * f4                           # x1 carry + ff accumulator
    live = (S * 3 * HF * f4                            # qkv
            + S * S * (f4 + b2) + S * F * (f4 + b2)    # one head's scores / out
            + 6 * S * D * f4                           # attn / norms / residuals
            + 2 * S * tff * f4)                        # h1 tile
    est = blocks + scratch + 2 * live + (8 << 20)
    return max(min(est, 64 << 20), 32 << 20)           # v7x-safe clamp


def encoders_pallas(x, params, n_heads, d_feature, *, ff_tile=None):
    """Run the whole stacked-layer encoder via a single pallas_call.

    x: (B, S, D) float32 (position encoding already added).
    params: dict of per-layer weights stacked along a leading layer axis L.
    """
    B, S, D = x.shape
    L, _, d_ff = params["w1"].shape
    HF = n_heads * d_feature
    tff = _pick_ff_tile(d_ff) if ff_tile is None else ff_tile
    assert d_ff % tff == 0, "d_ff must be a multiple of the ff tile"
    NF = d_ff // tff

    kernel = _make_encoder_stack_kernel(n_heads, d_feature)

    def layer_spec(arr):
        # One whole layer slab per grid step; re-fetched only when l changes.
        return pl.BlockSpec((1,) + arr.shape[1:], lambda b, l, f: (l, 0, 0))

    specs = {name: layer_spec(params[name]) for name in _PARAM_ORDER}
    # d_ff-tiled feed-forward weights (streamed per innermost grid step).
    specs["w1"] = pl.BlockSpec((1, D, tff), lambda b, l, f: (l, 0, f))
    specs["b1"] = pl.BlockSpec((1, 1, tff), lambda b, l, f: (l, 0, f))
    specs["w2"] = pl.BlockSpec((1, tff, D), lambda b, l, f: (l, f, 0))

    in_specs = [pl.BlockSpec((1, S, D), lambda b, l, f: (b, 0, 0))]
    in_specs += [specs[name] for name in _PARAM_ORDER]

    return pl.pallas_call(
        kernel,
        out_shape=jax.ShapeDtypeStruct((B, S, D), jnp.float32),
        grid=(B, L, NF),
        in_specs=in_specs,
        # Same block index across layer/ff axes => the activation stays
        # resident in VMEM (carry); written back once per batch element.
        out_specs=pl.BlockSpec((1, S, D), lambda b, l, f: (b, 0, 0)),
        scratch_shapes=[pltpu.VMEM((S, D), jnp.float32),   # x1 carry
                        pltpu.VMEM((S, D), jnp.float32)],  # FFN accumulator
        compiler_params=pltpu.CompilerParams(
            dimension_semantics=("parallel", "arbitrary", "arbitrary"),
            vmem_limit_bytes=_vmem_limit_bytes(S, D, HF, d_ff, tff, n_heads)),
    )(x, *[params[name] for name in _PARAM_ORDER])


# ---------------------------------------------------------------------------
# Plain-JAX glue: parameter init, position-encoding table, top-level forward
# ---------------------------------------------------------------------------
def position_encoding_table(d_model, max_length):
    pos = jnp.arange(max_length, dtype=jnp.float32)[:, None]
    idx = jnp.arange(0, d_model, 2, dtype=jnp.float32)[None, :]
    w_k = 1.0 / (10000.0 ** (idx / d_model))
    pe = jnp.zeros((max_length, d_model), jnp.float32)
    pe = pe.at[:, 0::2].set(jnp.sin(w_k * pos))
    pe = pe.at[:, 1::2].set(jnp.cos(w_k * pos))
    return pe                                                   # (max_length, D)


def init_stacked_params(key, n_layers, d_model, d_feature, d_ff, n_heads):
    """Per-layer params stacked on a leading layer axis.

    Matmul weights are stored in bfloat16 (MXU-native, half the DMA bytes);
    biases and LayerNorm params stay float32.  The attention scale 1/sqrt(d_k)
    is folded into the Q projection columns so the kernel never applies it.
    """
    HF = n_heads * d_feature
    ks = jax.random.split(key, 8)
    s = 0.05
    n = lambda k, shape: s * jax.random.normal(k, shape, jnp.float32)

    wqkv = n(ks[0], (n_layers, d_model, 3 * HF))   # [Wq | Wk | Wv] columns
    bqkv = n(ks[1], (n_layers, 1, 3 * HF))
    inv_sqrt_dk = 1.0 / math.sqrt(d_feature)
    wqkv = wqkv.at[:, :, :HF].multiply(inv_sqrt_dk)
    bqkv = bqkv.at[:, :, :HF].multiply(inv_sqrt_dk)

    return {
        "wqkv": wqkv.astype(jnp.bfloat16),
        "bqkv": bqkv,
        "w0":   n(ks[2], (n_layers, HF, d_model)).astype(jnp.bfloat16),
        "b0":   n(ks[3], (n_layers, 1, d_model)),
        "g1":   jnp.ones((n_layers, 1, d_model), jnp.float32),
        "be1":  jnp.zeros((n_layers, 1, d_model), jnp.float32),
        "w1":   n(ks[4], (n_layers, d_model, d_ff)).astype(jnp.bfloat16),
        "b1":   n(ks[5], (n_layers, 1, d_ff)),
        "w2":   n(ks[6], (n_layers, d_ff, d_model)).astype(jnp.bfloat16),
        "b2":   n(ks[7], (n_layers, 1, d_model)),
        "g2":   jnp.ones((n_layers, 1, d_model), jnp.float32),
        "be2":  jnp.zeros((n_layers, 1, d_model), jnp.float32),
    }


def encoders_forward(x, params, pe_table, n_heads, d_feature, *, ff_tile=None):
    B, S, D = x.shape
    # Guard against the reference's pe[:, seq_len, :] indexing quirk going OOB.
    assert S < pe_table.shape[0], "seq_len must be < max_length (pe[S] indexing)"
    # Reference quirk: adds the single PE row at index == seq_len (broadcast).
    x = (x + pe_table[S][None, None, :]).astype(jnp.float32)
    return encoders_pallas(x, params, n_heads, d_feature, ff_tile=ff_tile)


# ---------------------------------------------------------------------------
if __name__ == "__main__":
    # Small, lane-aligned demo shapes (D, HF, tff multiples of 128; d_ff tiled
    # into 2 blocks to exercise the FFN accumulator path).
    B, S = 2, 8
    d_model, d_feature, n_heads = 128, 32, 4
    d_ff, n_layers, max_length = 256, 2, 16

    key = jax.random.PRNGKey(0)
    xkey, pkey = jax.random.split(key)
    x = jax.random.normal(xkey, (B, S, d_model), jnp.float32)

    params = init_stacked_params(pkey, n_layers, d_model, d_feature, d_ff, n_heads)
    pe_table = position_encoding_table(d_model, max_length)

    out = encoders_forward(x, params, pe_table, n_heads, d_feature, ff_tile=128)
    out = jax.block_until_ready(out)
    assert out.shape == (B, S, d_model)
    assert bool(jnp.all(jnp.isfinite(out)))
    print("KERNEL_OK")
</pallas_src>

<mosaic_0001>
module attributes {stable_mosaic.version = 11 : i64} {
  func.func @kernel(%arg0: i32, %arg1: i32, %arg2: i32, %arg3: memref<1x8x128xf32, #tpu.memory_space<vmem>>, %arg4: memref<1x128x384xbf16, #tpu.memory_space<vmem>>, %arg5: memref<1x1x384xf32, #tpu.memory_space<vmem>>, %arg6: memref<1x128x128xbf16, #tpu.memory_space<vmem>>, %arg7: memref<1x1x128xf32, #tpu.memory_space<vmem>>, %arg8: memref<1x1x128xf32, #tpu.memory_space<vmem>>, %arg9: memref<1x1x128xf32, #tpu.memory_space<vmem>>, %arg10: memref<1x128x128xbf16, #tpu.memory_space<vmem>>, %arg11: memref<1x1x128xf32, #tpu.memory_space<vmem>>, %arg12: memref<1x128x128xbf16, #tpu.memory_space<vmem>>, %arg13: memref<1x1x128xf32, #tpu.memory_space<vmem>>, %arg14: memref<1x1x128xf32, #tpu.memory_space<vmem>>, %arg15: memref<1x1x128xf32, #tpu.memory_space<vmem>>, %arg16: memref<1x8x128xf32, #tpu.memory_space<vmem>>, %arg17: memref<8x128xf32, #tpu.memory_space<vmem>>, %arg18: memref<8x128xf32, #tpu.memory_space<vmem>>) attributes {dimension_semantics = [#tpu.dimension_semantics<parallel>, #tpu.dimension_semantics<arbitrary>, #tpu.dimension_semantics<arbitrary>], iteration_bounds = array<i64: 2, 2, 2>, scalar_prefetch = 0 : i64, scratch_operands = 2 : i64, tpu.core_type = #tpu.core_type<tc>, window_params = [{transform_indices = @transform_0, window_bounds = array<i64: 1, 8, 128>}, {transform_indices = @transform_1, window_bounds = array<i64: 1, 128, 384>}, {transform_indices = @transform_2, window_bounds = array<i64: 1, 1, 384>}, {transform_indices = @transform_3, window_bounds = array<i64: 1, 128, 128>}, {transform_indices = @transform_4, window_bounds = array<i64: 1, 1, 128>}, {transform_indices = @transform_5, window_bounds = array<i64: 1, 1, 128>}, {transform_indices = @transform_6, window_bounds = array<i64: 1, 1, 128>}, {transform_indices = @transform_7, window_bounds = array<i64: 1, 128, 128>}, {transform_indices = @transform_8, window_bounds = array<i64: 1, 1, 128>}, {transform_indices = @transform_9, window_bounds = array<i64: 1, 128, 128>}, {transform_indices = @transform_10, window_bounds = array<i64: 1, 1, 128>}, {transform_indices = @transform_11, window_bounds = array<i64: 1, 1, 128>}, {transform_indices = @transform_12, window_bounds = array<i64: 1, 1, 128>}, {transform_indices = @transform_13, window_bounds = array<i64: 1, 8, 128>}]} {
    %c0_i32 = arith.constant 0 : i32
    %0 = arith.cmpi eq, %arg1, %c0_i32 : i32
    %c0_i32_0 = arith.constant 0 : i32
    %1 = arith.cmpi eq, %arg2, %c0_i32_0 : i32
    %2 = arith.andi %0, %1 : i1
    %3 = arith.extui %2 : i1 to i32
    %c0_i32_1 = arith.constant 0 : i32
    %4 = arith.cmpi ne, %3, %c0_i32_1 : i32
    scf.if %4 {
      %c0_21 = arith.constant 0 : index
      %c0_22 = arith.constant 0 : index
      %c0_23 = arith.constant 0 : index
      %30 = vector.load %arg3[%c0_21, %c0_22, %c0_23] : memref<1x8x128xf32, #tpu.memory_space<vmem>>, vector<1x8x128xf32>
      %c0_24 = arith.constant 0 : index
      %c0_25 = arith.constant 0 : index
      %c0_26 = arith.constant 0 : index
      %31 = vector.load %arg16[%c0_24, %c0_25, %c0_26] : memref<1x8x128xf32, #tpu.memory_space<vmem>>, vector<1x8x128xf32>
      tpu.vector_store %arg16[%c0_24, %c0_25, %c0_26], %30 {strides = array<i32>} : memref<1x8x128xf32, #tpu.memory_space<vmem>>, vector<1x8x128xf32>,
    } else {
    }
    %c0_i32_2 = arith.constant 0 : i32
    %5 = arith.cmpi eq, %arg2, %c0_i32_2 : i32
    %6 = arith.extui %5 : i1 to i32
    %c0_i32_3 = arith.constant 0 : i32
    %7 = arith.cmpi ne, %6, %c0_i32_3 : i32
    scf.if %7 {
      %c0_21 = arith.constant 0 : index
      %c0_22 = arith.constant 0 : index
      %c0_23 = arith.constant 0 : index
      %30 = vector.load %arg16[%c0_21, %c0_22, %c0_23] : memref<1x8x128xf32, #tpu.memory_space<vmem>>, vector<1x8x128xf32>
      %31 = vector.shape_cast %30 : vector<1x8x128xf32> to vector<8x128xf32>
      %32 = arith.truncf %31 : vector<8x128xf32> to vector<8x128xbf16>
      %c0_24 = arith.constant 0 : index
      %c0_25 = arith.constant 0 : index
      %c0_26 = arith.constant 0 : index
      %33 = vector.load %arg4[%c0_24, %c0_25, %c0_26] : memref<1x128x384xbf16, #tpu.memory_space<vmem>>, vector<1x128x384xbf16>
      %34 = vector.shape_cast %33 : vector<1x128x384xbf16> to vector<128x384xbf16>
      %cst_27 = arith.constant dense<0.000000e+00> : vector<8x384xf32>
      %35 = tpu.matmul %32, %34, %cst_27 {dimension_numbers = #tpu.dot_dimension_numbers<[1], [0], [0], [1], [0, 0, 1, 1], [], []>} : vector<8x128xbf16>, vector<128x384xbf16>, vector<8x384xf32> -> vector<8x384xf32>
      %c0_28 = arith.constant 0 : index
      %c0_29 = arith.constant 0 : index
      %c0_30 = arith.constant 0 : index
      %36 = vector.load %arg5[%c0_28, %c0_29, %c0_30] : memref<1x1x384xf32, #tpu.memory_space<vmem>>, vector<1x1x384xf32>
      %37 = vector.shape_cast %36 : vector<1x1x384xf32> to vector<1x384xf32>
      %38 = vector.broadcast %37 : vector<1x384xf32> to vector<8x384xf32>
      %39 = arith.addf %35, %38 : vector<8x384xf32>
      %cst_31 = arith.constant 0.000000e+00 : f32
      %40 = vector.broadcast %cst_31 : f32 to vector<8x128xf32>
      %41 = vector.extract_strided_slice %39 {offsets = [0, 0], sizes = [8, 32], strides = [1, 1]} : vector<8x384xf32> to vector<8x32xf32>
      %42 = arith.truncf %41 : vector<8x32xf32> to vector<8x32xbf16>
      %43 = vector.extract_strided_slice %39 {offsets = [0, 128], sizes = [8, 32], strides = [1, 1]} : vector<8x384xf32> to vector<8x32xf32>
      %44 = arith.truncf %43 : vector<8x32xf32> to vector<8x32xbf16>
      %45 = vector.extract_strided_slice %39 {offsets = [0, 256], sizes = [8, 32], strides = [1, 1]} : vector<8x384xf32> to vector<8x32xf32>
      %46 = arith.truncf %45 : vector<8x32xf32> to vector<8x32xbf16>
      %cst_32 = arith.constant dense<0.000000e+00> : vector<8x8xf32>
      %47 = tpu.matmul %44, %42, %cst_32 {dimension_numbers = #tpu.dot_dimension_numbers<[1], [1], [0], [0], [0, 0, 1, 0], [], []>} : vector<8x32xbf16>, vector<8x32xbf16>, vector<8x8xf32> -> vector<8x8xf32>
      %cst_33 = arith.constant dense<0xFF800000> : vector<8xf32>
      %48 = vector.multi_reduction <maximumf>, %47, %cst_33 [1] : vector<8x8xf32> to vector<8xf32>
      %49 = vector.shape_cast %48 : vector<8xf32> to vector<8x1xf32>
      %50 = vector.broadcast %49 : vector<8x1xf32> to vector<8x8xf32>
      %51 = arith.subf %47, %50 : vector<8x8xf32>
      %52 = math.exp %51 : vector<8x8xf32>
      %cst_34 = arith.constant dense<0.000000e+00> : vector<8xf32>
      %53 = vector.multi_reduction <add>, %52, %cst_34 [1] : vector<8x8xf32> to vector<8xf32>
      %54 = vector.shape_cast %53 : vector<8xf32> to vector<8x1xf32>
      %55 = tpu.reciprocal %54 {approx = true} : vector<8x1xf32> -> vector<8x1xf32>
      %56 = vector.broadcast %55 : vector<8x1xf32> to vector<8x8xf32>
      %57 = arith.mulf %52, %56 : vector<8x8xf32>
      %58 = arith.truncf %57 : vector<8x8xf32> to vector<8x8xbf16>
      %cst_35 = arith.constant dense<0.000000e+00> : vector<8x32xf32>
      %59 = tpu.matmul %58, %46, %cst_35 {dimension_numbers = #tpu.dot_dimension_numbers<[1], [0], [0], [1], [0, 0, 1, 1], [], []>} : vector<8x8xbf16>, vector<8x32xbf16>, vector<8x32xf32> -> vector<8x32xf32>
      %60 = arith.truncf %59 : vector<8x32xf32> to vector<8x32xbf16>
      %c0_36 = arith.constant 0 : index
      %c0_37 = arith.constant 0 : index
      %c0_38 = arith.constant 0 : index
      %61 = vector.load %arg6[%c0_36, %c0_37, %c0_38] : memref<1x128x128xbf16, #tpu.memory_space<vmem>>, vector<1x32x128xbf16>
      %62 = vector.shape_cast %61 : vector<1x32x128xbf16> to vector<32x128xbf16>
      %cst_39 = arith.constant dense<0.000000e+00> : vector<8x128xf32>
      %63 = tpu.matmul %60, %62, %cst_39 {dimension_numbers = #tpu.dot_dimension_numbers<[1], [0], [0], [1], [0, 0, 1, 1], [], []>} : vector<8x32xbf16>, vector<32x128xbf16>, vector<8x128xf32> -> vector<8x128xf32>
      %64 = arith.addf %40, %63 : vector<8x128xf32>
      %65 = vector.extract_strided_slice %39 {offsets = [0, 32], sizes = [8, 32], strides = [1, 1]} : vector<8x384xf32> to vector<8x32xf32>
      %66 = arith.truncf %65 : vector<8x32xf32> to vector<8x32xbf16>
      %67 = vector.extract_strided_slice %39 {offsets = [0, 160], sizes = [8, 32], strides = [1, 1]} : vector<8x384xf32> to vector<8x32xf32>
      %68 = arith.truncf %67 : vector<8x32xf32> to vector<8x32xbf16>
      %69 = vector.extract_strided_slice %39 {offsets = [0, 288], sizes = [8, 32], strides = [1, 1]} : vector<8x384xf32> to vector<8x32xf32>
      %70 = arith.truncf %69 : vector<8x32xf32> to vector<8x32xbf16>
      %cst_40 = arith.constant dense<0.000000e+00> : vector<8x8xf32>
      %71 = tpu.matmul %68, %66, %cst_40 {dimension_numbers = #tpu.dot_dimension_numbers<[1], [1], [0], [0], [0, 0, 1, 0], [], []>} : vector<8x32xbf16>, vector<8x32xbf16>, vector<8x8xf32> -> vector<8x8xf32>
      %cst_41 = arith.constant dense<0xFF800000> : vector<8xf32>
      %72 = vector.multi_reduction <maximumf>, %71, %cst_41 [1] : vector<8x8xf32> to vector<8xf32>
      %73 = vector.shape_cast %72 : vector<8xf32> to vector<8x1xf32>
      %74 = vector.broadcast %73 : vector<8x1xf32> to vector<8x8xf32>
      %75 = arith.subf %71, %74 : vector<8x8xf32>
      %76 = math.exp %75 : vector<8x8xf32>
      %cst_42 = arith.constant dense<0.000000e+00> : vector<8xf32>
      %77 = vector.multi_reduction <add>, %76, %cst_42 [1] : vector<8x8xf32> to vector<8xf32>
      %78 = vector.shape_cast %77 : vector<8xf32> to vector<8x1xf32>
      %79 = tpu.reciprocal %78 {approx = true} : vector<8x1xf32> -> vector<8x1xf32>
      %80 = vector.broadcast %79 : vector<8x1xf32> to vector<8x8xf32>
      %81 = arith.mulf %76, %80 : vector<8x8xf32>
      %82 = arith.truncf %81 : vector<8x8xf32> to vector<8x8xbf16>
      %cst_43 = arith.constant dense<0.000000e+00> : vector<8x32xf32>
      %83 = tpu.matmul %82, %70, %cst_43 {dimension_numbers = #tpu.dot_dimension_numbers<[1], [0], [0], [1], [0, 0, 1, 1], [], []>} : vector<8x8xbf16>, vector<8x32xbf16>, vector<8x32xf32> -> vector<8x32xf32>
      %84 = arith.truncf %83 : vector<8x32xf32> to vector<8x32xbf16>
      %c0_44 = arith.constant 0 : index
      %c32 = arith.constant 32 : index
      %c0_45 = arith.constant 0 : index
      %85 = vector.load %arg6[%c0_44, %c32, %c0_45] : memref<1x128x128xbf16, #tpu.memory_space<vmem>>, vector<1x32x128xbf16>
      %86 = vector.shape_cast %85 : vector<1x32x128xbf16> to vector<32x128xbf16>
      %cst_46 = arith.constant dense<0.000000e+00> : vector<8x128xf32>
      %87 = tpu.matmul %84, %86, %cst_46 {dimension_numbers = #tpu.dot_dimension_numbers<[1], [0], [0], [1], [0, 0, 1, 1], [], []>} : vector<8x32xbf16>, vector<32x128xbf16>, vector<8x128xf32> -> vector<8x128xf32>
      %88 = arith.addf %64, %87 : vector<8x128xf32>
      %89 = vector.extract_strided_slice %39 {offsets = [0, 64], sizes = [8, 32], strides = [1, 1]} : vector<8x384xf32> to vector<8x32xf32>
      %90 = arith.truncf %89 : vector<8x32xf32> to vector<8x32xbf16>
      %91 = vector.extract_strided_slice %39 {offsets = [0, 192], sizes = [8, 32], strides = [1, 1]} : vector<8x384xf32> to vector<8x32xf32>
      %92 = arith.truncf %91 : vector<8x32xf32> to vector<8x32xbf16>
      %93 = vector.extract_strided_slice %39 {offsets = [0, 320], sizes = [8, 32], strides = [1, 1]} : vector<8x384xf32> to vector<8x32xf32>
      %94 = arith.truncf %93 : vector<8x32xf32> to vector<8x32xbf16>
      %cst_47 = arith.constant dense<0.000000e+00> : vector<8x8xf32>
      %95 = tpu.matmul %92, %90, %cst_47 {dimension_numbers = #tpu.dot_dimension_numbers<[1], [1], [0], [0], [0, 0, 1, 0], [], []>} : vector<8x32xbf16>, vector<8x32xbf16>, vector<8x8xf32> -> vector<8x8xf32>
      %cst_48 = arith.constant dense<0xFF800000> : vector<8xf32>
      %96 = vector.multi_reduction <maximumf>, %95, %cst_48 [1] : vector<8x8xf32> to vector<8xf32>
      %97 = vector.shape_cast %96 : vector<8xf32> to vector<8x1xf32>
      %98 = vector.broadcast %97 : vector<8x1xf32> to vector<8x8xf32>
      %99 = arith.subf %95, %98 : vector<8x8xf32>
      %100 = math.exp %99 : vector<8x8xf32>
      %cst_49 = arith.constant dense<0.000000e+00> : vector<8xf32>
      %101 = vector.multi_reduction <add>, %100, %cst_49 [1] : vector<8x8xf32> to vector<8xf32>
      %102 = vector.shape_cast %101 : vector<8xf32> to vector<8x1xf32>
      %103 = tpu.reciprocal %102 {approx = true} : vector<8x1xf32> -> vector<8x1xf32>
      %104 = vector.broadcast %103 : vector<8x1xf32> to vector<8x8xf32>
      %105 = arith.mulf %100, %104 : vector<8x8xf32>
      %106 = arith.truncf %105 : vector<8x8xf32> to vector<8x8xbf16>
      %cst_50 = arith.constant dense<0.000000e+00> : vector<8x32xf32>
      %107 = tpu.matmul %106, %94, %cst_50 {dimension_numbers = #tpu.dot_dimension_numbers<[1], [0], [0], [1], [0, 0, 1, 1], [], []>} : vector<8x8xbf16>, vector<8x32xbf16>, vector<8x32xf32> -> vector<8x32xf32>
      %108 = arith.truncf %107 : vector<8x32xf32> to vector<8x32xbf16>
      %c0_51 = arith.constant 0 : index
      %c64 = arith.constant 64 : index
      %c0_52 = arith.constant 0 : index
      %109 = vector.load %arg6[%c0_51, %c64, %c0_52] : memref<1x128x128xbf16, #tpu.memory_space<vmem>>, vector<1x32x128xbf16>
      %110 = vector.shape_cast %109 : vector<1x32x128xbf16> to vector<32x128xbf16>
      %cst_53 = arith.constant dense<0.000000e+00> : vector<8x128xf32>
      %111 = tpu.matmul %108, %110, %cst_53 {dimension_numbers = #tpu.dot_dimension_numbers<[1], [0], [0], [1], [0, 0, 1, 1], [], []>} : vector<8x32xbf16>, vector<32x128xbf16>, vector<8x128xf32> -> vector<8x128xf32>
      %112 = arith.addf %88, %111 : vector<8x128xf32>
      %113 = vector.extract_strided_slice %39 {offsets = [0, 96], sizes = [8, 32], strides = [1, 1]} : vector<8x384xf32> to vector<8x32xf32>
      %114 = arith.truncf %113 : vector<8x32xf32> to vector<8x32xbf16>
      %115 = vector.extract_strided_slice %39 {offsets = [0, 224], sizes = [8, 32], strides = [1, 1]} : vector<8x384xf32> to vector<8x32xf32>
      %116 = arith.truncf %115 : vector<8x32xf32> to vector<8x32xbf16>
      %117 = vector.extract_strided_slice %39 {offsets = [0, 352], sizes = [8, 32], strides = [1, 1]} : vector<8x384xf32> to vector<8x32xf32>
      %118 = arith.truncf %117 : vector<8x32xf32> to vector<8x32xbf16>
      %cst_54 = arith.constant dense<0.000000e+00> : vector<8x8xf32>
      %119 = tpu.matmul %116, %114, %cst_54 {dimension_numbers = #tpu.dot_dimension_numbers<[1], [1], [0], [0], [0, 0, 1, 0], [], []>} : vector<8x32xbf16>, vector<8x32xbf16>, vector<8x8xf32> -> vector<8x8xf32>
      %cst_55 = arith.constant dense<0xFF800000> : vector<8xf32>
      %120 = vector.multi_reduction <maximumf>, %119, %cst_55 [1] : vector<8x8xf32> to vector<8xf32>
      %121 = vector.shape_cast %120 : vector<8xf32> to vector<8x1xf32>
      %122 = vector.broadcast %121 : vector<8x1xf32> to vector<8x8xf32>
      %123 = arith.subf %119, %122 : vector<8x8xf32>
      %124 = math.exp %123 : vector<8x8xf32>
      %cst_56 = arith.constant dense<0.000000e+00> : vector<8xf32>
      %125 = vector.multi_reduction <add>, %124, %cst_56 [1] : vector<8x8xf32> to vector<8xf32>
      %126 = vector.shape_cast %125 : vector<8xf32> to vector<8x1xf32>
      %127 = tpu.reciprocal %126 {approx = true} : vector<8x1xf32> -> vector<8x1xf32>
      %128 = vector.broadcast %127 : vector<8x1xf32> to vector<8x8xf32>
      %129 = arith.mulf %124, %128 : vector<8x8xf32>
      %130 = arith.truncf %129 : vector<8x8xf32> to vector<8x8xbf16>
      %cst_57 = arith.constant dense<0.000000e+00> : vector<8x32xf32>
      %131 = tpu.matmul %130, %118, %cst_57 {dimension_numbers = #tpu.dot_dimension_numbers<[1], [0], [0], [1], [0, 0, 1, 1], [], []>} : vector<8x8xbf16>, vector<8x32xbf16>, vector<8x32xf32> -> vector<8x32xf32>
      %132 = arith.truncf %131 : vector<8x32xf32> to vector<8x32xbf16>
      %c0_58 = arith.constant 0 : index
      %c96 = arith.constant 96 : index
      %c0_59 = arith.constant 0 : index
      %133 = vector.load %arg6[%c0_58, %c96, %c0_59] : memref<1x128x128xbf16, #tpu.memory_space<vmem>>, vector<1x32x128xbf16>
      %134 = vector.shape_cast %133 : vector<1x32x128xbf16> to vector<32x128xbf16>
      %cst_60 = arith.constant dense<0.000000e+00> : vector<8x128xf32>
      %135 = tpu.matmul %132, %134, %cst_60 {dimension_numbers = #tpu.dot_dimension_numbers<[1], [0], [0], [1], [0, 0, 1, 1], [], []>} : vector<8x32xbf16>, vector<32x128xbf16>, vector<8x128xf32> -> vector<8x128xf32>
      %136 = arith.addf %112, %135 : vector<8x128xf32>
      %c0_61 = arith.constant 0 : index
      %c0_62 = arith.constant 0 : index
      %c0_63 = arith.constant 0 : index
      %137 = vector.load %arg7[%c0_61, %c0_62, %c0_63] : memref<1x1x128xf32, #tpu.memory_space<vmem>>, vector<1x1x128xf32>
      %138 = vector.shape_cast %137 : vector<1x1x128xf32> to vector<1x128xf32>
      %139 = vector.broadcast %138 : vector<1x128xf32> to vector<8x128xf32>
      %140 = arith.addf %136, %139 : vector<8x128xf32>
      %cst_64 = arith.constant dense<0.000000e+00> : vector<8xf32>
      %141 = vector.multi_reduction <add>, %140, %cst_64 [1] : vector<8x128xf32> to vector<8xf32>
      %142 = vector.shape_cast %141 : vector<8xf32> to vector<8x1xf32>
      %cst_65 = arith.constant 1.280000e+02 : f32
      %143 = vector.broadcast %cst_65 : f32 to vector<8x1xf32>
      %144 = arith.divf %142, %143 : vector<8x1xf32>
      %145 = vector.broadcast %144 : vector<8x1xf32> to vector<8x128xf32>
      %146 = arith.subf %140, %145 : vector<8x128xf32>
      %147 = arith.mulf %146, %146 : vector<8x128xf32>
      %cst_66 = arith.constant dense<0.000000e+00> : vector<8xf32>
      %148 = vector.multi_reduction <add>, %147, %cst_66 [1] : vector<8x128xf32> to vector<8xf32>
      %149 = vector.shape_cast %148 : vector<8xf32> to vector<8x1xf32>
      %cst_67 = arith.constant 1.280000e+02 : f32
      %150 = vector.broadcast %cst_67 : f32 to vector<8x1xf32>
      %151 = arith.divf %149, %150 : vector<8x1xf32>
      %cst_68 = arith.constant 9.99999974E-6 : f32
      %152 = vector.broadcast %cst_68 : f32 to vector<8x1xf32>
      %153 = arith.addf %151, %152 : vector<8x1xf32>
      %154 = math.rsqrt %153 : vector<8x1xf32>
      %155 = vector.broadcast %154 : vector<8x1xf32> to vector<8x128xf32>
      %156 = arith.mulf %146, %155 : vector<8x128xf32>
      %c0_69 = arith.constant 0 : index
      %c0_70 = arith.constant 0 : index
      %c0_71 = arith.constant 0 : index
      %157 = vector.load %arg8[%c0_69, %c0_70, %c0_71] : memref<1x1x128xf32, #tpu.memory_space<vmem>>, vector<1x1x128xf32>
      %158 = vector.shape_cast %157 : vector<1x1x128xf32> to vector<1x128xf32>
      %159 = vector.broadcast %158 : vector<1x128xf32> to vector<8x128xf32>
      %160 = arith.mulf %156, %159 : vector<8x128xf32>
      %c0_72 = arith.constant 0 : index
      %c0_73 = arith.constant 0 : index
      %c0_74 = arith.constant 0 : index
      %161 = vector.load %arg9[%c0_72, %c0_73, %c0_74] : memref<1x1x128xf32, #tpu.memory_space<vmem>>, vector<1x1x128xf32>
      %162 = vector.shape_cast %161 : vector<1x1x128xf32> to vector<1x128xf32>
      %163 = vector.broadcast %162 : vector<1x128xf32> to vector<8x128xf32>
      %164 = arith.addf %160, %163 : vector<8x128xf32>
      %165 = arith.addf %31, %164 : vector<8x128xf32>
      %c0_75 = arith.constant 0 : index
      %c0_76 = arith.constant 0 : index
      %166 = vector.load %arg17[%c0_75, %c0_76] : memref<8x128xf32, #tpu.memory_space<vmem>>, vector<8x128xf32>
      tpu.vector_store %arg17[%c0_75, %c0_76], %165 {strides = array<i32>} : memref<8x128xf32, #tpu.memory_space<vmem>>, vector<8x128xf32>,
      %cst_77 = arith.constant 0.000000e+00 : f32
      %167 = vector.broadcast %cst_77 : f32 to vector<8x128xf32>
      %c0_78 = arith.constant 0 : index
      %c0_79 = arith.constant 0 : index
      %168 = vector.load %arg18[%c0_78, %c0_79] : memref<8x128xf32, #tpu.memory_space<vmem>>, vector<8x128xf32>
      tpu.vector_store %arg18[%c0_78, %c0_79], %167 {strides = array<i32>} : memref<8x128xf32, #tpu.memory_space<vmem>>, vector<8x128xf32>,
    } else {
    }
    %c0 = arith.constant 0 : index
    %c0_4 = arith.constant 0 : index
    %8 = vector.load %arg17[%c0, %c0_4] : memref<8x128xf32, #tpu.memory_space<vmem>>, vector<8x128xf32>
    %9 = arith.truncf %8 : vector<8x128xf32> to vector<8x128xbf16>
    %c0_5 = arith.constant 0 : index
    %c0_6 = arith.constant 0 : index
    %c0_7 = arith.constant 0 : index
    %10 = vector.load %arg10[%c0_5, %c0_6, %c0_7] : memref<1x128x128xbf16, #tpu.memory_space<vmem>>, vector<1x128x128xbf16>
    %11 = vector.shape_cast %10 : vector<1x128x128xbf16> to vector<128x128xbf16>
    %cst = arith.constant dense<0.000000e+00> : vector<8x128xf32>
    %12 = tpu.matmul %9, %11, %cst {dimension_numbers = #tpu.dot_dimension_numbers<[1], [0], [0], [1], [0, 0, 1, 1], [], []>} : vector<8x128xbf16>, vector<128x128xbf16>, vector<8x128xf32> -> vector<8x128xf32>
    %c0_8 = arith.constant 0 : index
    %c0_9 = arith.constant 0 : index
    %c0_10 = arith.constant 0 : index
    %13 = vector.load %arg11[%c0_8, %c0_9, %c0_10] : memref<1x1x128xf32, #tpu.memory_space<vmem>>, vector<1x1x128xf32>
    %14 = vector.shape_cast %13 : vector<1x1x128xf32> to vector<1x128xf32>
    %15 = vector.broadcast %14 : vector<1x128xf32> to vector<8x128xf32>
    %16 = arith.addf %12, %15 : vector<8x128xf32>
    %cst_11 = arith.constant 1.000000e-01 : f32
    %17 = vector.broadcast %cst_11 : f32 to vector<8x128xf32>
    %18 = arith.mulf %17, %16 : vector<8x128xf32>
    %19 = arith.maximumf %16, %18 : vector<8x128xf32>
    %c0_12 = arith.constant 0 : index
    %c0_13 = arith.constant 0 : index
    %20 = vector.load %arg18[%c0_12, %c0_13] : memref<8x128xf32, #tpu.memory_space<vmem>>, vector<8x128xf32>
    %21 = arith.truncf %19 : vector<8x128xf32> to vector<8x128xbf16>
    %c0_14 = arith.constant 0 : index
    %c0_15 = arith.constant 0 : index
    %c0_16 = arith.constant 0 : index
    %22 = vector.load %arg12[%c0_14, %c0_15, %c0_16] : memref<1x128x128xbf16, #tpu.memory_space<vmem>>, vector<1x128x128xbf16>
    %23 = vector.shape_cast %22 : vector<1x128x128xbf16> to vector<128x128xbf16>
    %cst_17 = arith.constant dense<0.000000e+00> : vector<8x128xf32>
    %24 = tpu.matmul %21, %23, %cst_17 {dimension_numbers = #tpu.dot_dimension_numbers<[1], [0], [0], [1], [0, 0, 1, 1], [], []>} : vector<8x128xbf16>, vector<128x128xbf16>, vector<8x128xf32> -> vector<8x128xf32>
    %25 = arith.addf %20, %24 : vector<8x128xf32>
    %c0_18 = arith.constant 0 : index
    %c0_19 = arith.constant 0 : index
    %26 = vector.load %arg18[%c0_18, %c0_19] : memref<8x128xf32, #tpu.memory_space<vmem>>, vector<8x128xf32>
    tpu.vector_store %arg18[%c0_18, %c0_19], %25 {strides = array<i32>} : memref<8x128xf32, #tpu.memory_space<vmem>>, vector<8x128xf32>,
    %c1_i32 = arith.constant 1 : i32
    %27 = arith.cmpi eq, %arg2, %c1_i32 : i32
    %28 = arith.extui %27 : i1 to i32
    %c0_i32_20 = arith.constant 0 : i32
    %29 = arith.cmpi ne, %28, %c0_i32_20 : i32
    scf.if %29 {
      %c0_21 = arith.constant 0 : index
      %c0_22 = arith.constant 0 : index
      %30 = vector.load %arg18[%c0_21, %c0_22] : memref<8x128xf32, #tpu.memory_space<vmem>>, vector<8x128xf32>
      %c0_23 = arith.constant 0 : index
      %c0_24 = arith.constant 0 : index
      %c0_25 = arith.constant 0 : index
      %31 = vector.load %arg13[%c0_23, %c0_24, %c0_25] : memref<1x1x128xf32, #tpu.memory_space<vmem>>, vector<1x1x128xf32>
      %32 = vector.shape_cast %31 : vector<1x1x128xf32> to vector<1x128xf32>
      %33 = vector.broadcast %32 : vector<1x128xf32> to vector<8x128xf32>
      %34 = arith.addf %30, %33 : vector<8x128xf32>
      %cst_26 = arith.constant dense<0.000000e+00> : vector<8xf32>
      %35 = vector.multi_reduction <add>, %34, %cst_26 [1] : vector<8x128xf32> to vector<8xf32>
      %36 = vector.shape_cast %35 : vector<8xf32> to vector<8x1xf32>
      %cst_27 = arith.constant 1.280000e+02 : f32
      %37 = vector.broadcast %cst_27 : f32 to vector<8x1xf32>
      %38 = arith.divf %36, %37 : vector<8x1xf32>
      %39 = vector.broadcast %38 : vector<8x1xf32> to vector<8x128xf32>
      %40 = arith.subf %34, %39 : vector<8x128xf32>
      %41 = arith.mulf %40, %40 : vector<8x128xf32>
      %cst_28 = arith.constant dense<0.000000e+00> : vector<8xf32>
      %42 = vector.multi_reduction <add>, %41, %cst_28 [1] : vector<8x128xf32> to vector<8xf32>
      %43 = vector.shape_cast %42 : vector<8xf32> to vector<8x1xf32>
      %cst_29 = arith.constant 1.280000e+02 : f32
      %44 = vector.broadcast %cst_29 : f32 to vector<8x1xf32>
      %45 = arith.divf %43, %44 : vector<8x1xf32>
      %cst_30 = arith.constant 9.99999974E-6 : f32
      %46 = vector.broadcast %cst_30 : f32 to vector<8x1xf32>
      %47 = arith.addf %45, %46 : vector<8x1xf32>
      %48 = math.rsqrt %47 : vector<8x1xf32>
      %49 = vector.broadcast %48 : vector<8x1xf32> to vector<8x128xf32>
      %50 = arith.mulf %40, %49 : vector<8x128xf32>
      %c0_31 = arith.constant 0 : index
      %c0_32 = arith.constant 0 : index
      %c0_33 = arith.constant 0 : index
      %51 = vector.load %arg14[%c0_31, %c0_32, %c0_33] : memref<1x1x128xf32, #tpu.memory_space<vmem>>, vector<1x1x128xf32>
      %52 = vector.shape_cast %51 : vector<1x1x128xf32> to vector<1x128xf32>
      %53 = vector.broadcast %52 : vector<1x128xf32> to vector<8x128xf32>
      %54 = arith.mulf %50, %53 : vector<8x128xf32>
      %c0_34 = arith.constant 0 : index
      %c0_35 = arith.constant 0 : index
      %c0_36 = arith.constant 0 : index
      %55 = vector.load %arg15[%c0_34, %c0_35, %c0_36] : memref<1x1x128xf32, #tpu.memory_space<vmem>>, vector<1x1x128xf32>
      %56 = vector.shape_cast %55 : vector<1x1x128xf32> to vector<1x128xf32>
      %57 = vector.broadcast %56 : vector<1x128xf32> to vector<8x128xf32>
      %58 = arith.addf %54, %57 : vector<8x128xf32>
      %c0_37 = arith.constant 0 : index
      %c0_38 = arith.constant 0 : index
      %59 = vector.load %arg17[%c0_37, %c0_38] : memref<8x128xf32, #tpu.memory_space<vmem>>, vector<8x128xf32>
      %60 = arith.addf %59, %58 : vector<8x128xf32>
      %c0_39 = arith.constant 0 : index
      %c0_40 = arith.constant 0 : index
      %c0_41 = arith.constant 0 : index
      %61 = vector.load %arg16[%c0_39, %c0_40, %c0_41] : memref<1x8x128xf32, #tpu.memory_space<vmem>>, vector<1x8x128xf32>
      %62 = vector.shape_cast %61 : vector<1x8x128xf32> to vector<8x128xf32>
      %63 = vector.shape_cast %60 : vector<8x128xf32> to vector<1x8x128xf32>
      tpu.vector_store %arg16[%c0_39, %c0_40, %c0_41], %63 {strides = array<i32>} : memref<1x8x128xf32, #tpu.memory_space<vmem>>, vector<1x8x128xf32>,
    } else {
    }
    return
  }
  func.func @transform_0(%arg0: i32, %arg1: i32, %arg2: i32) -> (i32, i32, i32) {
    %c0_i32 = arith.constant 0 : i32
    %c0_i32_0 = arith.constant 0 : i32
    %c0_i32_1 = arith.constant 0 : i32
    return %arg0, %c0_i32, %c0_i32_0 : i32, i32, i32
  }
  func.func @transform_1(%arg0: i32, %arg1: i32, %arg2: i32) -> (i32, i32, i32) {
    %c0_i32 = arith.constant 0 : i32
    %c0_i32_0 = arith.constant 0 : i32
    %c0_i32_1 = arith.constant 0 : i32
    return %arg1, %c0_i32, %c0_i32_0 : i32, i32, i32
  }
  func.func @transform_2(%arg0: i32, %arg1: i32, %arg2: i32) -> (i32, i32, i32) {
    %c0_i32 = arith.constant 0 : i32
    %c0_i32_0 = arith.constant 0 : i32
    %c0_i32_1 = arith.constant 0 : i32
    return %arg1, %c0_i32, %c0_i32_0 : i32, i32, i32
  }
  func.func @transform_3(%arg0: i32, %arg1: i32, %arg2: i32) -> (i32, i32, i32) {
    %c0_i32 = arith.constant 0 : i32
    %c0_i32_0 = arith.constant 0 : i32
    %c0_i32_1 = arith.constant 0 : i32
    return %arg1, %c0_i32, %c0_i32_0 : i32, i32, i32
  }
  func.func @transform_4(%arg0: i32, %arg1: i32, %arg2: i32) -> (i32, i32, i32) {
    %c0_i32 = arith.constant 0 : i32
    %c0_i32_0 = arith.constant 0 : i32
    %c0_i32_1 = arith.constant 0 : i32
    return %arg1, %c0_i32, %c0_i32_0 : i32, i32, i32
  }
  func.func @transform_5(%arg0: i32, %arg1: i32, %arg2: i32) -> (i32, i32, i32) {
    %c0_i32 = arith.constant 0 : i32
    %c0_i32_0 = arith.constant 0 : i32
    %c0_i32_1 = arith.constant 0 : i32
    return %arg1, %c0_i32, %c0_i32_0 : i32, i32, i32
  }
  func.func @transform_6(%arg0: i32, %arg1: i32, %arg2: i32) -> (i32, i32, i32) {
    %c0_i32 = arith.constant 0 : i32
    %c0_i32_0 = arith.constant 0 : i32
    %c0_i32_1 = arith.constant 0 : i32
    return %arg1, %c0_i32, %c0_i32_0 : i32, i32, i32
  }
  func.func @transform_7(%arg0: i32, %arg1: i32, %arg2: i32) -> (i32, i32, i32) {
    %c0_i32 = arith.constant 0 : i32
    %c0_i32_0 = arith.constant 0 : i32
    return %arg1, %c0_i32, %arg2 : i32, i32, i32
  }
  func.func @transform_8(%arg0: i32, %arg1: i32, %arg2: i32) -> (i32, i32, i32) {
    %c0_i32 = arith.constant 0 : i32
    %c0_i32_0 = arith.constant 0 : i32
    return %arg1, %c0_i32, %arg2 : i32, i32, i32
  }
  func.func @transform_9(%arg0: i32, %arg1: i32, %arg2: i32) -> (i32, i32, i32) {
    %c0_i32 = arith.constant 0 : i32
    %c0_i32_0 = arith.constant 0 : i32
    return %arg1, %arg2, %c0_i32 : i32, i32, i32
  }
  func.func @transform_10(%arg0: i32, %arg1: i32, %arg2: i32) -> (i32, i32, i32) {
    %c0_i32 = arith.constant 0 : i32
    %c0_i32_0 = arith.constant 0 : i32
    %c0_i32_1 = arith.constant 0 : i32
    return %arg1, %c0_i32, %c0_i32_0 : i32, i32, i32
  }
  func.func @transform_11(%arg0: i32, %arg1: i32, %arg2: i32) -> (i32, i32, i32) {
    %c0_i32 = arith.constant 0 : i32
    %c0_i32_0 = arith.constant 0 : i32
    %c0_i32_1 = arith.constant 0 : i32
    return %arg1, %c0_i32, %c0_i32_0 : i32, i32, i32
  }
  func.func @transform_12(%arg0: i32, %arg1: i32, %arg2: i32) -> (i32, i32, i32) {
    %c0_i32 = arith.constant 0 : i32
    %c0_i32_0 = arith.constant 0 : i32
    %c0_i32_1 = arith.constant 0 : i32
    return %arg1, %c0_i32, %c0_i32_0 : i32, i32, i32
  }
  func.func @transform_13(%arg0: i32, %arg1: i32, %arg2: i32) -> (i32, i32, i32) {
    %c0_i32 = arith.constant 0 : i32
    %c0_i32_0 = arith.constant 0 : i32
    %c0_i32_1 = arith.constant 0 : i32
    return %arg0, %c0_i32, %c0_i32_0 : i32, i32, i32
  }
}

</mosaic_0001>

<bundles_post_ra>
// kernel: tpu_custom_call.1
= control target key start
LH: loop header
LB: loop body
LE: loop exit
PB: predicated region body
PF: predicated region fallthrough
CT: control target
= control target key end

     0   :  { %s4019_s0 = inlined_call_operand.hbm [shape: f32[2,8,128], index: 0, kind: input, shape index: {}]   ;;  %s4020_s1 = inlined_call_operand.hbm [shape: bf16[2,128,384], index: 1, kind: input, shape index: {}]   ;;  %s4021_s2 = inlined_call_operand.hbm [shape: f32[2,1,384], index: 2, kind: input, shape index: {}]   ;;  %s4022_s3 = inlined_call_operand.hbm [shape: bf16[2,128,128], index: 3, kind: input, shape index: {}]   ;;  %s4023_s4 = inlined_call_operand.vmem [shape: f32[2,1,128], index: 4, kind: input, shape index: {}]   ;;  %s4024_s5 = inlined_call_operand.vmem [shape: f32[2,1,128], index: 5, kind: input, shape index: {}]   ;;  %s4025_s6 = inlined_call_operand.vmem [shape: f32[2,1,128], index: 6, kind: input, shape index: {}]   ;;  %s4026_s7 = inlined_call_operand.hbm [shape: bf16[2,128,256], index: 7, kind: input, shape index: {}]   ;;  %s4027_s8 = inlined_call_operand.vmem [shape: f32[2,1,256], index: 8, kind: input, shape index: {}]   ;;  %s4028_s9 = inlined_call_operand.hbm [shape: bf16[2,256,128], index: 9, kind: input, shape index: {}]   ;;  %s4029_s10 = inlined_call_operand.vmem [shape: f32[2,1,128], index: 10, kind: input, shape index: {}]   ;;  %s4030_s11 = inlined_call_operand.vmem [shape: f32[2,1,128], index: 11, kind: input, shape index: {}]   ;;  %s4031_s12 = inlined_call_operand.vmem [shape: f32[2,1,128], index: 12, kind: input, shape index: {}]   ;;  %s4032_s13 = inlined_call_operand.hbm [shape: f32[2,8,128], index: 13, kind: output, shape index: {}]  }
   0x1   :  { %4068 = sst [smem:[#allocation45_spill]] %s4019_s0 }
   0x2   :  { %4069 = sst [smem:[#allocation46_spill]] %s4020_s1 }
   0x3   :  { %4070 = sst [smem:[#allocation47_spill]] %s4021_s2 }
   0x4   :  { %4071 = sst [smem:[#allocation48_spill]] %s4022_s3 }
   0x5   :  { %4072 = sst [smem:[#allocation49_spill]] %s4023_s4 }
   0x6   :  { %4073 = sst [smem:[#allocation50_spill]] %s4024_s5 }
   0x7   :  { %4074 = sst [smem:[#allocation51_spill]] %s4025_s6 }
   0x8   :  { %4075 = sst [smem:[#allocation52_spill]] %s4026_s7 }
   0x9   :  { %4076 = sst [smem:[#allocation53_spill]] %s4027_s8 }
   0xa   :  { %4077 = sst [smem:[#allocation54_spill]] %s4028_s9 }
   0xb   :  { %4078 = sst [smem:[#allocation55_spill]] %s4029_s10 }
   0xc   :  { %4079 = sst [smem:[#allocation56_spill]] %s4030_s11 }
   0xd   :  { %4080 = sst [smem:[#allocation57_spill]] %s4031_s12 }
   0xe   :  { %4081 = sst [smem:[#allocation58_spill]] %s4032_s13 }
   0xf   :  { %18 = vsyncpa [#allocation5], 0 }
  0x10   :  { %20 = vsyncpa [#allocation5 + $0x1], 0 }
  0x11   :  { %21 = vsyncpa [#allocation8], 0 }
  0x12   :  { %23 = vsyncpa [#allocation8 + $0x1], 0 }
  0x13   :  { %24 = vsyncpa [#allocation11], 0 }
  0x14   :  { %26 = vsyncpa [#allocation11 + $0x1], 0 }
  0x15   :  { %27 = vsyncpa [#allocation14], 0 }
  0x16   :  { %29 = vsyncpa [#allocation14 + $0x1], 0 }
  0x17   :  { %30 = vsyncpa [#allocation6], 0 }
  0x18   :  { %32 = vsyncpa [#allocation6 + $0x1], 0  ;;  %s3326_s25 = smov 0   ;;  %s3328_s26 = smov 0  }
  0x19   :  { %s3330_s27 = smov 0   ;;  %s3332_s28 = smov 0  }
  0x1a   :  { %s3334_s29 = smov 0   ;;  %s3336_s30 = smov 0  }
  0x1b   :  { %s3338_s14 = smov 0   ;;  %s3340_s15 = smov 0  }
  0x1c   :  { %s3342_s16 = smov 0   ;;  %s3344_s17 = smov 0  }
  0x1d   :  { %s3346_s18 = smov 0   ;;  %s3348_s19 = smov 0  }
  0x1e   :  { %s3350_s20 = smov 0   ;;  %s3352_s21 = smov 0  }
  0x1f   :  { %s3354_s22 = smov 0   ;;  %s3356_s23 = smov 0  }
  0x20 LB: > { %4082 = sst [smem:[#allocation22_spill]] %s3178_s26  ;;  %p4038_p0 = scmp.eq.s32.totalorder %s3234_s23, 0  ;;  %s3234_s23 = sphi %s3356_s23, %s38_s23   ;;  %s3230_s22 = sphi %s3354_s22, %s4179_s22   ;;  %s3226_s21 = sphi %s3352_s21, %s4178_s21   ;;  %s3222_s20 = sphi %s3350_s20, %s4177_s20   ;;  %s3218_s19 = sphi %s3348_s19, %s4176_s19   ;;  %s3214_s18 = sphi %s3346_s18, %s4175_s18   ;;  %s3210_s17 = sphi %s3344_s17, %s4174_s17   ;;  %s3206_s16 = sphi %s3342_s16, %s4173_s16   ;;  %s3202_s15 = sphi %s3340_s15, %s4172_s15   ;;  %s3198_s14 = sphi %s3338_s14, %s4171_s14   ;;  %s3194_s30 = sphi %s3336_s30, %s4170_s30   ;;  %s3190_s29 = sphi %s3334_s29, %s4169_s29   ;;  %s3186_s28 = sphi %s3332_s28, %s4168_s28   ;;  %s3182_s27 = sphi %s3330_s27, %s4167_s27   ;;  %s3178_s26 = sphi %s3328_s26, %s4166_s26   ;;  %s3174_s25 = sphi %s3326_s25, %s4165_s25  }
  0x21   : > { %4083 = sst [smem:[#allocation23_spill]] %s3182_s27  ;;  %p97_p1 = scmp.ne.s32.totalorder %s3194_s30, %s3190_s29 }
  0x22   : > { %4084 = sst [smem:[#allocation24_spill]] %s3190_s29  ;;  %p103_p2 = scmp.ne.s32.totalorder %s3190_s29, %s3186_s28 }
  0x23   : > { %4085 = sst [smem:[#allocation25_spill]] %s3194_s30  ;;  %p4044_p3 = scmp.lt.s32.totalorder %s3234_s23, 8 }
  0x24   : > { %4086 = sst [smem:[#allocation26_spill]] %s3198_s14  ;;  %p99_p4 = por %p97_p1, %p4038_p0 }
  0x25   : > { %4087 = sst [smem:[#allocation27_spill]] %s3202_s15  ;;  %s4037_s13 = sand.u32 1, %s3234_s23  }
  0x26   : > { %4088 = sst [smem:[#allocation28_spill]] %s3206_s16  ;;  %p3422_p5 = pnand %p4044_p3, %p99_p4 }
  0x27   : > { %4089 = sst [smem:[#allocation29_spill]] %s3210_s17  ;;  %s2629_s8 = smul.u32 3072, %s3226_s21 }
  0x28   : > { %4090 = sst [smem:[#allocation30_spill]] %s3214_s18  ;;  %s3432_s17 = scalar_lea.sflag [#allocation8], %s4037_s13 }
  0x29   : > { %4091 = sst [smem:[#allocation31_spill]] %s3218_s19  ;;  %s3417_s19 = sand.u32 1, %s3194_s30  }
  0x2a   : > { %4092 = sst [smem:[#allocation32_spill]] %s3222_s20  ;;  %s2628_s12 = smul.u32 192, %s3417_s19 }
  0x2b   : > { %4093 = sst [smem:[#allocation33_spill]] %s3226_s21  ;;  %p4039_p6 = pneg %p3422_p5 }
  0x2c   : > { %4094 = sst [smem:[#allocation34_spill]] %s3230_s22  ;;  %s467_s5 = scalar_lea.vmem [#allocation7], %s2628_s12 }
  0x2d   : > { %4095 = sst [smem:[#allocation35_spill]] %s3234_s23  ;;  %s474_s4 = sshll.u32 %s467_s5, 4  ;;  %s475_s4 = int_to_ptr.vmem [resolvable:$true] %s474_s4 }
  0x2e   : > { %s4097_s1 = sld [smem:[#allocation46_spill]]  ;;  %s2903_s18 = scalar_lea.vmem %s475_s4, 3072 }
  0x2f   : > { %p2904_p7 = scmp.ne.s32.totalorder %s475_s4, %s2903_s18  ;;  %s3236_s9 = smov [#allocation7]  }
  0x30   : > { %s2908_s7 = sshll.u32 %s3236_s9, 4  ;;  %s2909_s7 = int_to_ptr.vmem [resolvable:$false] %s2908_s7 }
  0x31   : > { %p2906_p8 = pnand %p2904_p7, %p4039_p6  ;;  %s2910_s27 = scalar_lea.vmem %s2909_s7, 6144 }
  0x32   : > { %p2911_p10 = scmp.lt.s32.totalorder %s475_s4, %s2909_s7  ;;  %p2912_p11 = scmp.lt.s32.totalorder %s2910_s27, %s2903_s18 }
  0x33   : > { %p2907_p9 = pneg %p2906_p8 }
  0x34   : > { %s473_s6 = scalar_lea.hbm %s4097_s1, %s2629_s8  ;;  %p2913_p12 = por %p2912_p11, %p2911_p10 }
  0x36   : > { %p2914_p13 = pnand %p2913_p12, %p2907_p9 }
  0x38   : > { %2917 = shalt.err (!%p2914_p13)
}
  0x39   : > { %s3237_s5 = smov 192   ;;  %s3238_s8 = smov 12  }
  0x3a   : > { %2654 = dma.hbm_to_vmem [thread:$0]  (!%p3422_p5), %s473_s6, 3072, %s475_s4, %s3432_s17, %s3237_s5, %s3237_s5, %s3238_s8  }
  0x3b   : > { %p2352_p1 = scmp.ge.s32.totalorder %s3234_s23, 1  ;;  %p613_p4 = scmp.lt.s32.totalorder %s3234_s23, 9 }
  0x3c   : > { %s2342_s9 = sshll.u32 %s3417_s19, 6  ;;  %s2432_s10 = sshll.u32 %s3226_s21, 10 }
  0x3d   : > { %p3445_p7 = pnand %p2352_p1, %p613_p4  ;;  %s507_s12 = scalar_lea.vmem [#allocation10], %s2342_s9 }
  0x3e   : > { %s514_s27 = sshll.u32 %s507_s12, 4  ;;  %s4099_s3 = sld [smem:[#allocation48_spill]]  ;;  %s515_s27 = int_to_ptr.vmem [resolvable:$true] %s514_s27 }
  0x3f   : > { %s4100_s1 = sand.u32 1, %s3234_s23   ;;  %s2931_s0 = scalar_lea.vmem %s515_s27, 1024 }
  0x40   : > { %s3455_s2 = scalar_lea.sflag [#allocation11], %s4100_s1  ;;  %p2932_p8 = scmp.ne.s32.totalorder %s515_s27, %s2931_s0 }
  0x41   : > { %s3239_s4 = smov [#allocation10]  }
  0x42   : > { %p2934_p9 = pnand %p2932_p8, %p4039_p6  ;;  %s2936_s6 = sshll.u32 %s3239_s4, 4  ;;  %s2937_s6 = int_to_ptr.vmem [resolvable:$false] %s2936_s6 }
  0x43   : > { %s2938_s5 = scalar_lea.vmem %s2937_s6, 2048  ;;  %p2939_p11 = scmp.lt.s32.totalorder %s515_s27, %s2937_s6 }
  0x44   : > { %s513_s13 = scalar_lea.hbm %s4099_s3, %s2432_s10  ;;  %p2935_p10 = pneg %p2934_p9 }
  0x45   : > { %p2940_p12 = scmp.lt.s32.totalorder %s2938_s5, %s2931_s0 }
  0x47   : > { %p2941_p13 = por %p2940_p12, %p2939_p11 }
  0x49   : > { %p2942_p1 = pnand %p2941_p13, %p2935_p10 }
  0x4b   : > { %2945 = shalt.err (!%p2942_p1)
}
  0x4c   : > { %s4040_s8 = smov 64   ;;  %s4042_s0 = smov 4  }
  0x4d   : > { %2660 = dma.hbm_to_vmem [thread:$0]  (!%p3422_p5), %s513_s13, 1024, %s515_s27, %s3455_s2, %s4040_s8, %s4040_s8, %s4042_s0  }
  0x4e   : > { %s3467_s1 = sadd.s32 4294967295, %s3234_s23   ;;  %s50_s10 = sadd.s32 1, %s3222_s20 }
  0x4f   : > { %s53_s12 = sadd.s32 1, %s3226_s21  ;;  %p51_p4 = scmp.ge.s32.totalorder %s50_s10, 2 }
  0x50   : > { %s57_s18 = sadd.s32 1, %s3230_s22  ;;  %s64_s24 = sadd.s32 1, %s3206_s16 }
  0x51   : > { %p71_p8 = scmp.ne.s32.totalorder %s3206_s16, %s3202_s15  ;;  %s4181_s10 = smov (%p51_p4, %s50_s10), 0 }
  0x52   : > { %4101 = sst [smem:[#allocation36_spill]] %s4181_s10  ;;  %s4183_s12 = smov (!%p51_p4, %s53_s12), %s3226_s21 }
  0x53   : > { %p3484_p9 = por %p4038_p0, %p71_p8  ;;  %p4045_p10 = scmp.ne.s32.totalorder %s3202_s15, %s3198_s14 }
  0x54   : > { %p55_p11 = scmp.ge.s32.totalorder %s4183_s12, 2  ;;  %p78_p12 = scmp.eq.s32.totalorder %s3467_s1, 0 }
  0x55   : > { %s244_s27 = ssub.s32 %s3222_s20, %s4181_s10  ;;  %p261_p13 = scmp.ne.s32.totalorder %s3178_s26, %s3174_s25 }
  0x56   : > { %s4185_s12 = smov (%p55_p11, %s4183_s12), 0  ;;  %s4187_s18 = smov (!%p55_p11, %s57_s18), %s3230_s22 }
  0x57   : > { %4103 = sst [smem:[#allocation37_spill]] %s4185_s12  ;;  %p3503_p1 = por %p78_p12, %p4045_p10 }
  0x58   : > { %s87_s6 = ssub.s32 %s3226_s21, %s4185_s12  ;;  %p59_p4 = scmp.ge.s32.totalorder %s4187_s18, 2 }
  0x59   : > { %p88_p0 = scmp.eq.s32.totalorder %s87_s6, 0  ;;  %p3514_p6 = por %p103_p2, %p78_p12 }
  0x5a   : > { %s3518_s8 = sor.u32 %s244_s27, %s87_s6  ;;  %s4189_s18 = smov (%p59_p4, %s4187_s18), 0 }
  0x5b   : > { %s4105_s5 = scalar_select %p3514_p6, 1, 0 }
  0x5c   : > { %4106 = sst [smem:[#allocation38_spill]] %s4189_s18  ;;  %s4107_s0 = sadd.s32 1, %s3194_s30 }
  0x5d   : > { %s3525_s9 = scalar_select %p88_p0, %s3194_s30, %s4107_s0  }
  0x5e   : > { %s61_s3 = ssub.s32 %s3230_s22, %s4189_s18  ;;  %p3535_p2 = por %p261_p13, %p78_p12 }
  0x5f   : > { %4108 = sst [smem:[#allocation39_spill]] %s3525_s9  ;;  %p62_p3 = scmp.eq.s32.totalorder %s61_s3, 0 }
  0x60   : > { %s4109_s28 = scalar_select %p3535_p2, 1, 0 }
  0x61   : > { %p419_p10 = scmp.eq.s32.totalorder %s3467_s1, 7  ;;  %s4111_s27 = sadd.s32 4294967294, %s3234_s23  }
  0x62   : > { %4110 = sst [smem:[#allocation40_spill]] %s4109_s28  ;;  %p425_p4 = scmp.eq.s32.totalorder %s4111_s27, 7 }
  0x63   : > { %s3543_s6 = scalar_select %p62_p3, %s3206_s16, %s64_s24  }
  0x64   : > { %p3548_p0 = por %p419_p10, %p71_p8  ;;  %p4115_p11 = scmp.ne.s32.totalorder %s3202_s15, %s3198_s14 }
  0x65   : > { %4112 = sst [smem:[#allocation41_spill]] %s3543_s6  ;;  %s445_s25 = sand.u32 1, %s3206_s16  }
  0x66   : > { %s4113_s0 = scalar_select %p3548_p0, 1, 0 }
  0x67   : > { %p3555_p6 = por %p425_p4, %p4115_p11  ;;  %s2339_s18 = sshll.u32 %s3230_s22, 7 }
  0x68   : > { %4114 = sst [smem:[#allocation42_spill]] %s4113_s0  ;;  %s2338_s12 = sshll.u32 %s445_s25, 3 }
  0x69   : > { %s4116_s3 = scalar_select %p3555_p6, 1, 0 }
  0x6a   : > { %s4118_s30 = sld [smem:[#allocation45_spill]]  ;;  %s449_s27 = scalar_lea.vmem [#allocation4], %s2338_s12 }
  0x6b   : > { %4117 = sst [smem:[#allocation43_spill]] %s4116_s3  ;;  %s456_s24 = sshll.u32 %s449_s27, 4  ;;  %s457_s24 = int_to_ptr.vmem [resolvable:$true] %s456_s24 }
  0x6c   : > { %p4119_p3 = scmp.lt.s32.totalorder %s3234_s23, 8  ;;  %s2630_s14 = smul.u32 3, %s3417_s19 }
  0x6d   : > { %s2631_s0 = smul.u32 48, %s3226_s21  ;;  %s446_s3 = scalar_lea.sflag [#allocation5], %s445_s25 }
  0x6e   : > { %p3568_p8 = pnand %p4119_p3, %p3484_p9  ;;  %s2959_s22 = scalar_lea.vmem %s457_s24, 128 }
  0x6f   : > { %p2960_p12 = scmp.ne.s32.totalorder %s457_s24, %s2959_s22 }
  0x70   : > { %s454_s28 = scalar_lea.hbm %s4118_s30, %s2339_s18  ;;  %p2948_p10 = pneg %p3568_p8 }
  0x71   : > { %s3242_s30 = smov [#allocation4]  }
  0x72   : > { %p2962_p13 = pnand %p2960_p12, %p2948_p10  ;;  %s2964_s9 = sshll.u32 %s3242_s30, 4  ;;  %s2965_s9 = int_to_ptr.vmem [resolvable:$false] %s2964_s9 }
  0x73   : > { %s2966_s10 = scalar_lea.vmem %s2965_s9, 256  ;;  %p2967_p4 = scmp.lt.s32.totalorder %s457_s24, %s2965_s9 }
  0x74   : > { %p2963_p11 = pneg %p2962_p13  ;;  %p2968_p9 = scmp.lt.s32.totalorder %s2966_s10, %s2959_s22 }
  0x76   : > { %p2969_p3 = por %p2968_p9, %p2967_p4 }
  0x78   : > { %p2970_p6 = pnand %p2969_p3, %p2963_p11 }
  0x7a   : > { %2973 = shalt.err (!%p2970_p6)
}
  0x7b   : > { %2651 = dma.hbm_to_vmem [thread:$0]  (!%p3568_p8), %s454_s28, 128, %s457_s24, %s446_s3  }
  0x7c   : > { %s4121_s18 = sld [smem:[#allocation47_spill]]  ;;  %s488_s25 = scalar_lea.vmem [#allocation9], %s2630_s14 }
  0x7d   : > { %s496_s27 = sshll.u32 %s488_s25, 4  ;;  %p4122_p12 = pneg %p3422_p5  ;;  %s497_s27 = int_to_ptr.vmem [resolvable:$true] %s496_s27 }
  0x7e   : > { %s2987_s16 = scalar_lea.vmem %s497_s27, 48  ;;  %s3243_s22 = smov [#allocation9]  }
  0x7f   : > { %p2988_p10 = scmp.ne.s32.totalorder %s497_s27, %s2987_s16  ;;  %s2992_s30 = sshll.u32 %s3243_s22, 4  ;;  %s2993_s30 = int_to_ptr.vmem [resolvable:$false] %s2992_s30 }
  0x80   : > { %s2994_s9 = scalar_lea.vmem %s2993_s30, 96  ;;  %p2995_p6 = scmp.lt.s32.totalorder %s497_s27, %s2993_s30 }
  0x81   : > { %p2990_p13 = pnand %p2988_p10, %p4122_p12  ;;  %p2996_p11 = scmp.lt.s32.totalorder %s2994_s9, %s2987_s16 }
  0x82   : > { %s494_s13 = scalar_lea.hbm %s4121_s18, %s2631_s0 }
  0x83   : > { %p2991_p0 = pneg %p2990_p13  ;;  %p2997_p8 = por %p2996_p11, %p2995_p6 }
  0x85   : > { %p2998_p4 = pnand %p2997_p8, %p2991_p0 }
  0x87   : > { %3001 = shalt.err (!%p2998_p4)
}
  0x88   : > { %s4123_s14 = sld [smem:[#allocation23_spill]]  ;;  %p4124_p9 = scmp.eq.s32.totalorder %s3518_s8, 0 }
  0x89   : > { %2657 = dma.hbm_to_vmem [thread:$0]  (!%p3422_p5), %s494_s13, 48, %s497_s27, %s3432_s17  }
  0x8a   : > { %p4126_p3 = scmp.eq.s32.totalorder %s3234_s23, 0  ;;  %s2346_s0 = sshll.u32 %s3226_s21, 5 }
  0x8b   : > { %s551_s3 = sadd.s32 %s3222_s20, %s2346_s0  ;;  %s4127_s18 = sld [smem:[#allocation52_spill]] }
  0x8c   : > { %s2347_s24 = sshll.u32 %s551_s3, 6  ;;  %p4128_p5 = scmp.lt.s32.totalorder %s3234_s23, 8 }
  0x8d   : > { %s2349_s25 = sshll.u32 %s3222_s20, 4  ;;  %s3244_s22 = smov [#allocation12]  }
  0x8e   : > { %s248_s16 = sadd.s32 1, %s4123_s14  ;;  %p255_p0 = scmp.ne.s32.totalorder %s4123_s14, %s3178_s26 }
  0x8f   : > { %s3593_s28 = scalar_select %p4124_p9, %s4123_s14, %s248_s16  }
  0x90   : > { %p257_p10 = por %p255_p0, %p4126_p3  ;;  %s544_s11 = sand.u32 1, %s4123_s14  }
  0x91   : > { %4125 = sst [smem:[#allocation44_spill]] %s3593_s28  ;;  %s3600_s6 = sshll.u32 %s544_s11, 6 }
  0x92   : > { %s546_s10 = scalar_lea.vmem [#allocation12], %s3600_s6  ;;  %s553_s13 = scalar_lea.hbm %s4127_s18, %s2347_s24 }
  0x93   : > { %s554_s19 = sshll.u32 %s546_s10, 4  ;;  %p3612_p12 = pnand %p4128_p5, %p257_p10  ;;  %s555_s19 = int_to_ptr.vmem [resolvable:$true] %s554_s19 }
  0x94   : > { %s3015_s27 = scalar_lea.vmem %s555_s19, 1024  ;;  %s3020_s30 = sshll.u32 %s3244_s22, 4  ;;  %s3021_s30 = int_to_ptr.vmem [resolvable:$false] %s3020_s30 }
  0x95   : > { %p3004_p13 = pneg %p3612_p12  ;;  %p3016_p6 = scmp.ne.s32.totalorder %s555_s19, %s3015_s27 }
  0x96   : > { %s3022_s9 = scalar_lea.vmem %s3021_s30, 2048  ;;  %p3023_p4 = scmp.lt.s32.totalorder %s555_s19, %s3021_s30 }
  0x97   : > { %p3018_p11 = pnand %p3016_p6, %p3004_p13  ;;  %p3024_p0 = scmp.lt.s32.totalorder %s3022_s9, %s3015_s27 }
  0x99   : > { %p3019_p8 = pneg %p3018_p11  ;;  %p3025_p9 = por %p3024_p0, %p3023_p4 }
  0x9b   : > { %p3026_p3 = pnand %p3025_p9, %p3019_p8 }
  0x9d   : > { %3029 = shalt.err (!%p3026_p3)
}
  0x9e   : > { %s3245_s16 = smov 128   ;;  %s4130_s3 = smov 4  }
  0x9f   : > { %s4131_s24 = smov 64   ;;  %s584_s10 = sadd.s32 %s2349_s25, %s2346_s0 }
  0xa0   : > { %2663 = dma.hbm_to_vmem [thread:$0]  (!%p3612_p12), %s553_s13, 1024, %s555_s19, %s3455_s2, %s3245_s16, %s4131_s24, %s4130_s3  }
  0xa1   : > { %s578_s12 = scalar_lea.vmem [#allocation13], %s3600_s6  ;;  %s2351_s18 = sshll.u32 %s584_s10, 6 }
  0xa2   : > { %s587_s17 = sshll.u32 %s578_s12, 4  ;;  %s4132_s30 = sld [smem:[#allocation54_spill]]  ;;  %s588_s17 = int_to_ptr.vmem [resolvable:$true] %s587_s17 }
  0xa3   : > { %s575_s20 = scalar_lea.sflag [#allocation14], %s544_s11  ;;  %s3043_s28 = scalar_lea.vmem %s588_s17, 1024 }
  0xa4   : > { %p3044_p10 = scmp.ne.s32.totalorder %s588_s17, %s3043_s28  ;;  %s3246_s23 = smov [#allocation13]  }
  0xa5   : > { %s3048_s2 = sshll.u32 %s3246_s23, 4  ;;  %s3049_s2 = int_to_ptr.vmem [resolvable:$false] %s3048_s2 }
  0xa6   : > { %p3046_p5 = pnand %p3044_p10, %p3004_p13  ;;  %s3050_s0 = scalar_lea.vmem %s3049_s2, 2048 }
  0xa7   : > { %p3051_p11 = scmp.lt.s32.totalorder %s588_s17, %s3049_s2  ;;  %p3052_p8 = scmp.lt.s32.totalorder %s3050_s0, %s3043_s28 }
  0xa8   : > { %s586_s9 = scalar_lea.hbm %s4132_s30, %s2351_s18  ;;  %p3047_p6 = pneg %p3046_p5 }
  0xa9   : > { %p3053_p4 = por %p3052_p8, %p3051_p11 }
  0xab   : > { %p3054_p0 = pnand %p3053_p4, %p3047_p6 }
  0xad   : > { %3057 = shalt.err (!%p3054_p0)
}
  0xae   : > { %2666 = dma.hbm_to_vmem [thread:$0]  (!%p3612_p12), %s586_s9, 1024, %s588_s17, %s575_s20, %s4131_s24, %s4131_s24, %s4130_s3  }
  0xaf   : > { %617 = sbr.rel (%p3445_p7) target bundleno = 3794 (0xed2), region = 72  ;;  %s3646_s14 = sand.u32 (!%p3445_p7), 1, %s3202_s15  }
  0xb0   : > { %s4063_s23 = sshll.u32 (!%p3445_p7), %s3646_s14, 3  ;;  %s620_s28 = scalar_lea.sflag (!%p3445_p7), [#allocation5], %s3646_s14 }
  0xb1   : > { %s3652_s11 = scalar_lea.vmem (!%p3445_p7), [#allocation4], %s4063_s23 }
  0xb4   : > { %3149 = dma.done.wait (%p3503_p1), %s620_s28, 128  }
  0xb5   : > { %3151 = vsyncadd (%p3503_p1), %s620_s28, 4294967168  ;;  %s628_s20 = sand.u32 1, %s3467_s1   ;;  %s630_s7 = sand.u32 1, %s3190_s29  }
  0xb6   : > { %s2632_s6 = smul.u32 192, %s630_s7  ;;  %s629_s19 = scalar_lea.sflag [#allocation8], %s628_s20 }
  0xb7   : > { %p4133_p7 = scmp.ne.s32.totalorder %s4105_s5, 0 }
  0xb8   : > { %s3660_s13 = scalar_lea.vmem [#allocation7], %s2632_s6 }
  0xb9   : > { %3153 = dma.done.wait (%p4133_p7), %s629_s19, 3120  }
  0xba   : > { %3155 = vsyncadd (%p4133_p7), %s629_s19, 4294964176  ;;  %s2633_s8 = smul.u32 3, %s630_s7  ;;  %s2354_s25 = sshll.u32 %s630_s7, 6 }
  0xbb   : > { %s647_s4 = scalar_lea.sflag [#allocation11], %s628_s20  ;;  %s3668_s3 = scalar_lea.vmem [#allocation10], %s2354_s25 }
  0xbc   : > { %s3666_s16 = scalar_lea.vmem [#allocation9], %s2633_s8 }
  0xbd   : > { %3157 = dma.done.wait (%p4133_p7), %s647_s4, 1024  }
  0xbe   : > { %3159 = vsyncadd (%p4133_p7), %s647_s4, 4294966272  ;;  %s657_s24 = sand.u32 1, %s3178_s26  }
  0xbf   : > { %s2355_s10 = sshll.u32 %s657_s24, 6 }
  0xc0   : > { %s3675_s12 = scalar_lea.vmem [#allocation12], %s2355_s10 }
  0xc1   : > { %3161 = dma.done.wait (%p3535_p2), %s647_s4, 1024  }
  0xc2   : > { %3163 = vsyncadd (%p3535_p2), %s647_s4, 4294966272  ;;  %s665_s17 = scalar_lea.sflag [#allocation14], %s657_s24  ;;  %s3681_s18 = scalar_lea.vmem [#allocation13], %s2355_s10 }
  0xc3   : > { %3165 = dma.done.wait (%p3535_p2), %s665_s17, 1024  }
  0xc4   : > { %3167 = vsyncadd (%p3535_p2), %s665_s17, 4294966272  ;;  %s4135_s5 = sld [smem:[#allocation30_spill]] }
  0xc5   : > { %s4136_s27 = sld [smem:[#allocation29_spill]] }
  0xc6   : > { %s4139_s4 = sld [smem:[#allocation51_spill]] }
  0xc7   : > { %s4140_s21 = sld [smem:[#allocation55_spill]] }
  0xc8   : > { %s4141_s9 = sld [smem:[#allocation53_spill]] }
  0xc9   : > { %s4142_s20 = sld [smem:[#allocation56_spill]] }
  0xca   : > { %p761_p1 = scmp.lt.s32.totalorder %s4135_s5, 1  ;;  %p788_p13 = scmp.eq.s32.totalorder %s4135_s5, 0 }
  0xcb   : > { %p772_p12 = scmp.lt.s32.totalorder %s4136_s27, 1  ;;  %s4143_s8 = sld [smem:[#allocation57_spill]] }
  0xcc   : > { %s3691_s22 = scalar_select %p761_p1, %s4135_s5, 1 }
  0xcd   : > { %s773_s30 = scalar_select %p772_p12, %s4136_s27, 1 }
  0xce   : > { %s769_s1 = scalar_lea.vmem %s4139_s4, %s3691_s22  ;;  %s2358_s24 = sshll.u32 %s3691_s22, 1 }
  0xcf   : > { %s3707_s10 = sadd.s32 %s2358_s24, %s773_s30  ;;  %s780_s15 = scalar_lea.vmem %s4140_s21, %s3691_s22 }
  0xd0   : > { %s776_s2 = scalar_lea.vmem %s4141_s9, %s3707_s10  ;;  %s783_s7 = scalar_lea.vmem %s4142_s20, %s3691_s22 }
  0xd1   : > { %s786_s25 = scalar_lea.vmem %s4143_s8, %s3691_s22  ;;  %p789_p2 = scmp.eq.s32.totalorder %s4136_s27, 0 }
  0xd2   : > { %s4144_s30 = sshll.u32 %s3646_s14, 3 }
  0xd3   : > { %p790_p9 = pnand %p789_p2, %p788_p13  ;;  %s3730_s4 = scalar_lea.vmem [#allocation15], %s4144_s30 }
  0xd5   : > { %793 = sbr.rel (%p790_p9) target bundleno = 220 (0xdc), region = 100 }
  0xda   : > { %v794_v0 = vld [vmem:[%s3652_s11] sm:$0xff] }
  0xdb   : > { %795 = vst [vmem:[%s3730_s4] sm:$0xff] %v794_v0 }
  0xdc PF: > { %s4145_s26 = sld [smem:[#allocation29_spill]] }
  0xe2   : > { %p2359_p3 = scmp.ne.s32.totalorder %s4145_s26, 0 }
  0xe3   : > { %s3250_s29 = smov (!%p2359_p3), 96   ;;  %s3251_s21 = smov (!%p2359_p3), 64  }
  0xe4   : > { %798 = sbr.rel (%p2359_p3) target bundleno = 3019 (0xbcb), region = 104  ;;  %s3252_s23 = smov (!%p2359_p3), 32  }
  0xe5   : > { %s4148_s28 = sld [smem:[#allocation50_spill]] (!%p2359_p3) }
  0xe9   : > { %v2814_v1 = vld [vmem:[%s3660_s13 + $0xac] ss:$12 sps:$4 sm:$0xff]   ;;  %v2816_v2 = vld [vmem:[%s3660_s13 + $0xa8] ss:$12 sps:$4 sm:$0xff]   ;;  %v3247_v3 = vmov 0   ;;  %v3248_v20 = vmov 0.0   ;;  %v835_v21 = vlaneseq }
  0xea   : > { %1010 = vmatprep.mubr.bf16.mxu0 %v3247_v3  ;;  %978 = vmatprep.subr.bf16.mxu0 %v2814_v1  ;;  %v2817_v4 = vld [vmem:[%s3660_s13 + $0x94] ss:$12 sps:$4 sm:$0xff]   ;;  %v2819_v5 = vld [vmem:[%s3660_s13 + $0x90] ss:$12 sps:$4 sm:$0xff]   ;;  %v2822_v7 = vld [vmem:[%s3660_s13 + $0x78] ss:$12 sps:$4 sm:$0xff]  }
  0xeb   : > { %979 = vmatpush1.bf16.msra.mxu0 %v2816_v2  ;;  %v2820_v6 = vld [vmem:[%s3660_s13 + $0x7c] ss:$12 sps:$4 sm:$0xff]   ;;  %v2823_v8 = vld [vmem:[%s3660_s13 + $0x64] ss:$12 sps:$4 sm:$0xff]   ;;  %v2825_v9 = vld [vmem:[%s3660_s13 + $0x60] ss:$12 sps:$4 sm:$0xff]   ;;  %2488 = vmatprep.subr.bf16.mxu1 %v3248_v20  ;;  %s4149_s19 = scalar_lea.vmem %s4148_s28, %s3691_s22 }
  0xec   : > { %980 = vmatprep.subr.bf16.mxu0 %v2817_v4  ;;  %v2826_v10 = vld [vmem:[%s3660_s13 + $0x4c] ss:$12 sps:$4 sm:$0xff]   ;;  %v2828_v11 = vld [vmem:[%s3660_s13 + $0x48] ss:$12 sps:$4 sm:$0xff]   ;;  %v2831_v13 = vld [vmem:[%s3660_s13 + $0x30] ss:$12 sps:$4 sm:$0xff]  }
  0xed   : > { %v2829_v12 = vld [vmem:[%s3660_s13 + $0x34] ss:$12 sps:$4 sm:$0xff]   ;;  %v2832_v14 = vld [vmem:[%s3660_s13 + $0x1c] ss:$12 sps:$4 sm:$0xff]   ;;  %v2834_v15 = vld [vmem:[%s3660_s13 + $0x18] ss:$12 sps:$4 sm:$0xff]  }
  0xee   : > { %v2835_v16 = vld [vmem:[%s3660_s13 + $0x4] ss:$12 sps:$4 sm:$0xff]   ;;  %v2837_v17 = vld [vmem:[%s3660_s13] ss:$12 sps:$4 sm:$0xff]   ;;  %1782 = vst [vmem:[#allocation3] sm:$0xff] %v3248_v20  ;;  %vm3249_vm0 = vmmov 0  }
  0xef   : > { %981 = vmatpush1.bf16.msra.mxu0 %v2819_v5  ;;  %v3752_v18 = vld [vmem:[%s3730_s4] sm:$0xff]  ;;  %2504 = vmatprep.mubr.msk.bf16.mxu1 %vm3249_vm0, %v3248_v20  ;;  %v3763_v22 = vshrl.u32 %v835_v21, 7  ;;  %v3767_v24 = vld [vmem:[%s3666_s16] sm:$0x7]  ;;  %vm1062_vm1 = vcmask 261120   ;;  %vm1109_vm2 = vcmask 64512  }
  0xf0   : > { %982 = vmatprep.subr.bf16.mxu0 %v2820_v6  ;;  %v800_v19 = vpack.c.bf16 %v3752_v18, %v3752_v18  ;;  %v2838_v37 = vld [vmem:[%s3660_s13 + $0xb0] ss:$12 sps:$4 sm:$0xff]   ;;  %v2839_v38 = vld [vmem:[%s3660_s13 + $0x98] ss:$12 sps:$4 sm:$0xff]   ;;  %v2840_v39 = vld [vmem:[%s3660_s13 + $0x80] ss:$12 sps:$4 sm:$0xff]  }
  0xf1   : > { %v837_v23 = vsub.s32 0, %v3763_v22  ;;  %v841_v25 = vsub.s32 1, %v3763_v22  ;;  %2489 = vmatpush3.bf16.msra.mxu1 %v2838_v37  ;;  %v2841_v40 = vld [vmem:[%s3660_s13 + $0x68] ss:$12 sps:$4 sm:$0xff]   ;;  %v2842_v41 = vld [vmem:[%s3660_s13 + $0x50] ss:$12 sps:$4 sm:$0xff]  }
  0xf2   : > { %2490 = vmatprep.subr.bf16.mxu1 %v3248_v20  ;;  %v2843_v42 = vld [vmem:[%s3660_s13 + $0x38] ss:$12 sps:$4 sm:$0xff]   ;;  %v2844_v43 = vld [vmem:[%s3660_s13 + $0x20] ss:$12 sps:$4 sm:$0xff]   ;;  %v2845_v44 = vld [vmem:[%s3660_s13 + $0x8] ss:$12 sps:$4 sm:$0xff]  }
  0xf3   : > { %983 = vmatpush1.bf16.msra.mxu0 %v2822_v7  ;;  %v838_v26 = vrot.slane %v3767_v24, %v837_v23  ;;  %v842_v27 = vrot.slane %v3767_v24, %v841_v25  ;;  %v845_v3 = vsub.s32 2, %v3763_v22  ;;  %vm1125_vm3 = vcmask 1043456   ;;  %s4146_s16 = sld [smem:[#allocation49_spill]] }
  0xf4   : > { %984 = vmatprep.subr.bf16.mxu0 %v2823_v8 }
  0xf5   : > { %2491 = vmatpush3.bf16.msra.mxu1 %v2839_v38  ;;  %v846_v4 = vrot.slane %v3767_v24, %v845_v3 }
  0xf6   : > { %2492 = vmatprep.subr.bf16.mxu1 %v3248_v20 }
  0xf7   : > { %985 = vmatpush1.bf16.msra.mxu0 %v2825_v9 }
  0xf8   : > { %986 = vmatprep.subr.bf16.mxu0 %v2826_v10 }
  0xf9   : > { %2493 = vmatpush3.bf16.msra.mxu1 %v2840_v39  ;;  %s4147_s5 = scalar_lea.vmem %s4146_s16, %s3691_s22 }
  0xfa   : > { %2494 = vmatprep.subr.bf16.mxu1 %v3248_v20 }
  0xfb   : > { %987 = vmatpush1.bf16.msra.mxu0 %v2828_v11 }
  0xfc   : > { %988 = vmatprep.subr.bf16.mxu0 %v2829_v12 }
  0xfd   : > { %2495 = vmatpush3.bf16.msra.mxu1 %v2841_v40 }
  0xfe   : > { %2496 = vmatprep.subr.bf16.mxu1 %v3248_v20 }
  0xff   : > { %989 = vmatpush1.bf16.msra.mxu0 %v2831_v13 }
 0x100   : > { %990 = vmatprep.subr.bf16.mxu0 %v2832_v14 }
 0x101   : > { %2497 = vmatpush3.bf16.msra.mxu1 %v2842_v41 }
 0x102   : > { %2498 = vmatprep.subr.bf16.mxu1 %v3248_v20 }
 0x103   : > { %991 = vmatpush1.bf16.msra.mxu0 %v2834_v15 }
 0x104   : > { %992 = vmatprep.subr.bf16.mxu0 %v2835_v16 }
 0x105   : > { %2499 = vmatpush3.bf16.msra.mxu1 %v2843_v42 }
 0x106   : > { %2500 = vmatprep.subr.bf16.mxu1 %v3248_v20 }
 0x107   : > { %993 = vmatpush1.bf16.msra.mxu0 %v2837_v17  ;;  %v2848_v17 = vld [vmem:[%s3668_s3 + $0x18] sm:$0xff]  }
 0x108   : > { %2508 = vmatprep.subr.bf16.mxu0 %v3248_v20 }
 0x109   : > { %2501 = vmatpush3.bf16.msra.mxu1 %v2844_v43 }
 0x10a   : > { %1011 = vmatmul.mubr.bf16.vlgmr.msra.gmra.mxu0 %v800_v19  ;;  %2502 = vmatprep.subr.bf16.mxu1 %v3248_v20 }
 0x10b   : > { %2510 = vmatprep.mubr.msk.bf16.mxu0 %vm3249_vm0, %v3248_v20 }
 0x10d   : > { %2503 = vmatpush3.bf16.msra.mxu1 %v2845_v44 }
 0x10e   : > { %2514 = vmatprep.subr.bf16.mxu1 %v3248_v20 }
 0x110   : > { %2505 = vmatmul.mubr.bf16.vlgmr.msra.gmra.mxu1 %v800_v19  ;;  %v2849_v19 = vld [vmem:[%s3668_s3 + $0x10] sm:$0xff]  }
 0x111   : > { %2516 = vmatprep.mubr.msk.bf16.mxu1 %vm3249_vm0, %v3248_v20 }
 0x1ca   : > { %v1012_v28 = vpop.f32.mrf.mxu0 }
 0x1cb   : > { %v1013_v29 = vadd.f32 %v1012_v28, %v838_v26  ;;  %v2846_v26 = vld [vmem:[%s3668_s3 + $0x8] sm:$0xff]   ;;  %v2847_v28 = vld [vmem:[%s3668_s3] sm:$0xff]  }
 0x1cc   : > { %v1014_v30 = vpop.f32.mrf.mxu0 }
 0x1cd   : > { %v3772_v31 = vpack.c.bf16 %v1013_v29, %v1013_v29  ;;  %v1015_v32 = vadd.f32 %v1014_v30, %v842_v27 }
 0x1ce   : > { %v1016_v33 = vpop.f32.mrf.mxu0 }
 0x1cf   : > { %1178 = vrot.lane.b32.xlu0 %v3772_v31, %s3250_s29  ;;  %v1067_v34 = vsel %vm1062_vm1, %v3772_v31, 0  ;;  %v3778_v36 = vpack.c.bf16 %v1015_v32, %v1015_v32 }
 0x1d0   : > { %v1017_v35 = vpop.f32.mrf.mxu0  ;;  %2509 = vmatpush3.bf16.xpose.msra.mxu0 %v1067_v34  ;;  %v1053_v61 = vpop.f32.mrf.mxu1 }
 0x1d1   : > { %2520 = vmatprep.subr.bf16.mxu0 %v3248_v20  ;;  %v1054_v5 = vadd.f32 %v1053_v61, %v846_v4 }
 0x1d2   : > { %v2506_v62 = vpop.f32.mrf.mxu1 }
 0x1d3   : > { %1175 = vrot.lane.b32.xlu0 %v3778_v36, %s3250_s29  ;;  %v3815_v6 = vpack.c.bf16 %v1054_v5, %v1054_v5 }
 0x1d4   : > { %v1056_v63 = vpop.f32.mrf.mxu1 }
 0x1d5   : > { %v1127_v7 = vsel %vm1125_vm3, %v3815_v6, 0 }
 0x1d6   : > { %v2507_v0 = vpop.f32.mrf.mxu1  ;;  %2515 = vmatpush3.bf16.msra.mxu1 %v1127_v7 }
 0x1d7   : > { %2511 = vmatmul.mubr.msk.bf16.vlgmr.msra.gmra.mxu0 %vm1062_vm1, %v3778_v36  ;;  %2526 = vmatprep.subr.bf16.mxu1 %v3248_v20  ;;  %v2850_v0 = vld [vmem:[%s3668_s3 + $0x28] sm:$0xff]  }
 0x1d8   : > { %2522 = vmatprep.mubr.msk.bf16.mxu0 %vm3249_vm0, %v3248_v20 }
 0x241   : > { %v1179_v45 = vpop.permute.xlu0 %1178 }
 0x242   : > { %v1184_v46 = vsel %vm1062_vm1, %v1179_v45, 0 }
 0x243   : > { %2521 = vmatpush3.bf16.xpose.msra.mxu0 %v1184_v46 }
 0x244   : > { %2532 = vmatprep.subr.bf16.mxu0 %v3248_v20 }
 0x245   : > { %v1176_v47 = vpop.permute.xlu0 %1175 }
 0x24a   : > { %2523 = vmatmul.mubr.msk.bf16.vlgmr.msra.gmra.mxu0 %vm1062_vm1, %v1176_v47 }
 0x24b   : > { %2536 = vmatprep.mubr.msk.bf16.mxu0 %vm3249_vm0, %v3248_v20  ;;  %2533 = vmatpush3.bf16.msra.mxu0 %v2848_v17 }
 0x24c   : > { %2534 = vmatprep.subr.bf16.mxu0 %v3248_v20 }
 0x24f   : > { %2535 = vmatpush3.bf16.msra.mxu0 %v2849_v19 }
 0x250   : > { %2548 = vmatprep.subr.bf16.mxu0 %v3248_v20 }
 0x297   : > { %v1103_v48 = vpop.f32.mrf.mxu0 }
 0x298   : > { %v1110_v49 = vsel %vm1109_vm2, %v1103_v48, -inf }
 0x299   : > { %1111 = vmax.xlane.f32.xlu1 %v1110_v49  ;;  %v2512_v50 = vpop.f32.mrf.mxu0 }
 0x29b   : > { %v1106_v51 = vpop.f32.mrf.mxu0 }
 0x29d   : > { %v2513_v52 = vpop.f32.mrf.mxu0 }
 0x30a   : > { %v1220_v53 = vpop.f32.mrf.mxu0 }
 0x30b   : > { %v1226_v54 = vsel %vm1109_vm2, %v1220_v53, -inf }
 0x30c   : > { %1227 = vmax.xlane.f32.xlu1 %v1226_v54  ;;  %v2524_v55 = vpop.f32.mrf.mxu0 }
 0x30e   : > { %v1223_v56 = vpop.f32.mrf.mxu0 }
 0x310   : > { %v2525_v57 = vpop.f32.mrf.mxu0 }
 0x322   : > { %v1112_v58 = vpop.xlane.xlu1 %1111 }
 0x323   : > { %v1113_v59 = vsub.f32 %v1103_v48, %v1112_v58 }
 0x325   : > { %v1114_v60 = vmul.f32 1.442695, %v1113_v59 }
 0x327   : > { %2854 = vpow2.f32 %v1114_v60 }
 0x334   : > { %v2855_v1 = vpop.eup %2854 }
 0x335   : > { %v1116_v2 = vsel %vm1109_vm2, %v2855_v1, 0.0 }
 0x336   : > { %1117 = vadd.xlane.f32.xlu0 %v1116_v2 }
 0x34c   : > { %1464 = vrot.lane.b32.xlu0 %v3815_v6, %s3251_s21 }
 0x395   : > { %v1228_v8 = vpop.xlane.xlu1 %1227 }
 0x396   : > { %v1229_v9 = vsub.f32 %v1220_v53, %v1228_v8 }
 0x398   : > { %v1230_v10 = vmul.f32 1.442695, %v1229_v9 }
 0x39a   : > { %2856 = vpow2.f32 %v1230_v10 }
 0x3a7   : > { %v2857_v11 = vpop.eup %2856 }
 0x3a8   : > { %v1232_v12 = vsel %vm1109_vm2, %v2857_v11, 0.0 }
 0x3a9   : > { %1233 = vadd.xlane.f32.xlu1 %v1232_v12 }
 0x3ba   : > { %1239 = vrot.lane.b32.xlu1 %v3815_v6, %s3250_s29 }
 0x3be   : > { %1404 = vrot.lane.b32.xlu1 %v3772_v31, %s3251_s21 }
 0x3bf   : > { %v1118_v13 = vpop.xlane.xlu0 %1117 }
 0x3c0   : > { %2858 = vrcp.f32 %v1118_v13 }
 0x3c2   : > { %1402 = vrot.lane.b32.xlu1 %v3778_v36, %s3251_s21 }
 0x3c3   : > { %v1465_v29 = vpop.permute.xlu0 %1464 }
 0x3c4   : > { %v1470_v34 = vsel %vm1125_vm3, %v1465_v29, 0 }
 0x3cd   : > { %v2859_v14 = vpop.eup %2858 }
 0x3ce   : > { %v1120_v15 = vmul.f32 %v2859_v14, %v2855_v1 }
 0x3d0   : > { %v1121_v16 = vpack.c.bf16 %v1120_v15, %v1120_v15 }
 0x3d2   : > { %2517 = vmatmul.mubr.msk.bf16.vlgmr.msra.gmra.mxu1 %vm1109_vm2, %v1121_v16 }
 0x3d3   : > { %2528 = vmatprep.mubr.msk.bf16.mxu1 %vm3249_vm0, %v3248_v20 }
 0x432   : > { %v1234_v21 = vpop.xlane.xlu1 %1233 }
 0x433   : > { %2860 = vrcp.f32 %v1234_v21 }
 0x436   : > { %v1240_v22 = vpop.permute.xlu1 %1239 }
 0x437   : > { %v1245_v23 = vsel %vm1125_vm3, %v1240_v22, 0 }
 0x438   : > { %2527 = vmatpush3.bf16.msra.mxu1 %v1245_v23 }
 0x439   : > { %2540 = vmatprep.subr.bf16.mxu1 %v3248_v20 }
 0x43a   : > { %v1405_v38 = vpop.permute.xlu1 %1404 }
 0x43b   : > { %v1410_v42 = vsel %vm1062_vm1, %v1405_v38, 0 }
 0x43e   : > { %v1403_v45 = vpop.permute.xlu1 %1402 }
 0x440   : > { %v2861_v24 = vpop.eup %2860 }
 0x441   : > { %v1236_v25 = vmul.f32 %v2861_v24, %v2857_v11 }
 0x443   : > { %v1237_v27 = vpack.c.bf16 %v1236_v25, %v1236_v25 }
 0x445   : > { %2529 = vmatmul.mubr.msk.bf16.vlgmr.msra.gmra.mxu1 %vm1109_vm2, %v1237_v27  ;;  %v2852_v27 = vld [vmem:[%s3668_s3 + $0x38] sm:$0xff]  }
 0x446   : > { %2541 = vmatpush3.bf16.msra.mxu1 %v2846_v26  ;;  %2544 = vmatprep.mubr.msk.bf16.mxu1 %vm3249_vm0, %v3248_v20 }
 0x447   : > { %2542 = vmatprep.subr.bf16.mxu1 %v3248_v20 }
 0x44a   : > { %2543 = vmatpush3.bf16.msra.mxu1 %v2847_v28 }
 0x44b   : > { %2554 = vmatprep.subr.bf16.mxu1 %v3248_v20 }
 0x492   : > { %v1163_v30 = vpop.f32.mrf.mxu1 }
 0x493   : > { %v1169_v32 = vpack.c.bf16 %v1163_v30, %v1163_v30 }
 0x494   : > { %v2518_v33 = vpop.f32.mrf.mxu1 }
 0x495   : > { %2545 = vmatmul.mubr.msk.bf16.vlgmr.msra.gmra.mxu1 %vm1062_vm1, %v1169_v32 }
 0x496   : > { %2555 = vmatpush3.bf16.msra.mxu1 %v1470_v34  ;;  %v1166_v35 = vpop.f32.mrf.mxu1  ;;  %2556 = vmatprep.mubr.msk.bf16.mxu1 %vm3249_vm0, %v3248_v20 }
 0x497   : > { %2568 = vmatprep.subr.bf16.mxu1 %v3248_v20 }
 0x498   : > { %v2519_v37 = vpop.f32.mrf.mxu1 }
 0x505   : > { %v1281_v39 = vpop.f32.mrf.mxu1 }
 0x506   : > { %v1287_v40 = vpack.c.bf16 %v1281_v39, %v1281_v39  ;;  %v2853_v39 = vld [vmem:[%s3668_s3 + $0x30] sm:$0xff]  }
 0x507   : > { %v2530_v41 = vpop.f32.mrf.mxu1 }
 0x508   : > { %2537 = vmatmul.mubr.msk.bf16.vlgmr.msra.gmra.mxu0 %vm1062_vm1, %v1287_v40 }
 0x509   : > { %2549 = vmatpush3.bf16.xpose.msra.mxu0 %v1410_v42  ;;  %v1284_v43 = vpop.f32.mrf.mxu1  ;;  %2550 = vmatprep.mubr.msk.bf16.mxu0 %vm3249_vm0, %v3248_v20 }
 0x50a   : > { %2560 = vmatprep.subr.bf16.mxu0 %v3248_v20 }
 0x50b   : > { %v2531_v44 = vpop.f32.mrf.mxu1 }
 0x510   : > { %2551 = vmatmul.mubr.msk.bf16.vlgmr.msra.gmra.mxu0 %vm1062_vm1, %v1403_v45  ;;  %v2404_v45 = vld [vmem:[%s4147_s5] ss:$0 sm:$0xff] }
 0x511   : > { %2564 = vmatprep.mubr.msk.bf16.mxu0 %vm3249_vm0, %v3248_v20  ;;  %2561 = vmatpush3.bf16.msra.mxu0 %v2850_v0 }
 0x512   : > { %2562 = vmatprep.subr.bf16.mxu0 %v3248_v20 }
 0x555   : > { %v3855_v46 = vpop.f32.mrf.mxu1 }
 0x557   : > { %v2546_v47 = vpop.f32.mrf.mxu1 }
 0x559   : > { %v1399_v48 = vpop.f32.mrf.mxu1 }
 0x55b   : > { %v2547_v49 = vpop.f32.mrf.mxu1 }
 0x5c8   : > { %v1341_v50 = vpop.f32.mrf.mxu0 }
 0x5c9   : > { %v1397_v25 = vadd.f32 %v3855_v46, %v1341_v50 }
 0x5ca   : > { %v2538_v51 = vpop.f32.mrf.mxu0 }
 0x5cc   : > { %v1344_v52 = vpop.f32.mrf.mxu0 }
 0x5ce   : > { %v2539_v53 = vpop.f32.mrf.mxu0 }
 0x5d0   : > { %v1446_v54 = vpop.f32.mrf.mxu0 }
 0x5d1   : > { %v1452_v55 = vsel %vm1109_vm2, %v1446_v54, -inf }
 0x5d2   : > { %1453 = vmax.xlane.f32.xlu1 %v1452_v55  ;;  %v2552_v56 = vpop.f32.mrf.mxu0 }
 0x5d4   : > { %v1449_v57 = vpop.f32.mrf.mxu0 }
 0x5d6   : > { %v2553_v58 = vpop.f32.mrf.mxu0 }
 0x65b   : > { %v1454_v59 = vpop.xlane.xlu1 %1453 }
 0x65c   : > { %v1455_v60 = vsub.f32 %v1446_v54, %v1454_v59  ;;  %v2405_v59 = vld [vmem:[%s4149_s19] ss:$0 sm:$0xff] }
 0x65e   : > { %v1456_v61 = vmul.f32 1.442695, %v1455_v60 }
 0x660   : > { %2862 = vpow2.f32 %v1456_v61  ;;  %v2406_v61 = vld [vmem:[%s769_s1] ss:$0 sm:$0xff] }
 0x66d   : > { %v2863_v62 = vpop.eup %2862 }
 0x66e   : > { %v1458_v63 = vsel %vm1109_vm2, %v2863_v62, 0.0 }
 0x66f   : > { %1459 = vadd.xlane.f32.xlu0 %v1458_v63 }
 0x685   : > { %1575 = vrot.lane.b32.xlu0 %v3772_v31, %s3252_s23 }
 0x689   : > { %1573 = vrot.lane.b32.xlu0 %v3778_v36, %s3252_s23  ;;  %v2851_v36 = vld [vmem:[%s3668_s3 + $0x20] sm:$0xff]  }
 0x68a   : > { %2563 = vmatpush3.bf16.msra.mxu0 %v2851_v36 }
 0x68b   : > { %2574 = vmatprep.subr.bf16.mxu0 %v3248_v20 }
 0x6f8   : > { %v1460_v1 = vpop.xlane.xlu0 %1459 }
 0x6f9   : > { %2864 = vrcp.f32 %v1460_v1 }
 0x6fc   : > { %v1576_v4 = vpop.permute.xlu0 %1575 }
 0x6fd   : > { %v1581_v7 = vsel %vm1062_vm1, %v1576_v4, 0 }
 0x700   : > { %v1574_v31 = vpop.permute.xlu0 %1573 }
 0x706   : > { %v2865_v2 = vpop.eup %2864 }
 0x707   : > { %v1462_v3 = vmul.f32 %v2865_v2, %v2863_v62 }
 0x709   : > { %v1463_v5 = vpack.c.bf16 %v1462_v3, %v1462_v3 }
 0x70b   : > { %2557 = vmatmul.mubr.msk.bf16.vlgmr.msra.gmra.mxu1 %vm1109_vm2, %v1463_v5 }
 0x70c   : > { %2569 = vmatpush3.bf16.xpose.msra.mxu1 %v1581_v7  ;;  %2570 = vmatprep.mubr.msk.bf16.mxu1 %vm3249_vm0, %v3248_v20 }
 0x70d   : > { %2580 = vmatprep.subr.bf16.mxu1 %v3248_v20 }
 0x713   : > { %2571 = vmatmul.mubr.msk.bf16.vlgmr.msra.gmra.mxu1 %vm1062_vm1, %v1574_v31 }
 0x714   : > { %2584 = vmatprep.mubr.msk.bf16.mxu1 %vm3249_vm0, %v3248_v20  ;;  %2581 = vmatpush3.bf16.msra.mxu1 %v2852_v27 }
 0x715   : > { %2582 = vmatprep.subr.bf16.mxu1 %v3248_v20 }
 0x718   : > { %2583 = vmatpush3.bf16.msra.mxu1 %v2853_v39 }
 0x7cb   : > { %v1506_v8 = vpop.f32.mrf.mxu1 }
 0x7cc   : > { %v1512_v9 = vpack.c.bf16 %v1506_v8, %v1506_v8 }
 0x7cd   : > { %v2558_v10 = vpop.f32.mrf.mxu1 }
 0x7ce   : > { %2565 = vmatmul.mubr.msk.bf16.vlgmr.msra.gmra.mxu0 %vm1062_vm1, %v1512_v9 }
 0x7cf   : > { %v1509_v11 = vpop.f32.mrf.mxu1  ;;  %2576 = vmatprep.mubr.msk.bf16.mxu0 %vm3249_vm0, %v3248_v20 }
 0x7d1   : > { %v2559_v12 = vpop.f32.mrf.mxu1 }
 0x7d3   : > { %v1617_v13 = vpop.f32.mrf.mxu1 }
 0x7d4   : > { %v1623_v14 = vsel %vm1109_vm2, %v1617_v13, -inf }
 0x7d5   : > { %1624 = vmax.xlane.f32.xlu0 %v1623_v14  ;;  %v2572_v15 = vpop.f32.mrf.mxu1 }
 0x7d7   : > { %v1620_v16 = vpop.f32.mrf.mxu1 }
 0x7d9   : > { %v2573_v17 = vpop.f32.mrf.mxu1 }
 0x85e   : > { %v1625_v19 = vpop.xlane.xlu0 %1624 }
 0x85f   : > { %v1626_v21 = vsub.f32 %v1617_v13, %v1625_v19 }
 0x861   : > { %v1627_v22 = vmul.f32 1.442695, %v1626_v21 }
 0x863   : > { %2866 = vpow2.f32 %v1627_v22 }
 0x870   : > { %v2867_v23 = vpop.eup %2866 }
 0x871   : > { %v1629_v24 = vsel %vm1109_vm2, %v2867_v23, 0.0 }
 0x872   : > { %1630 = vadd.xlane.f32.xlu1 %v1629_v24 }
 0x883   : > { %1635 = vrot.lane.b32.xlu1 %v3815_v6, %s3252_s23 }
 0x88e   : > { %v1566_v26 = vpop.f32.mrf.mxu0 }
 0x88f   : > { %v1572_v28 = vadd.f32 %v1566_v26, %v1397_v25 }
 0x890   : > { %v2566_v29 = vpop.f32.mrf.mxu0 }
 0x892   : > { %v1569_v30 = vpop.f32.mrf.mxu0 }
 0x894   : > { %v2567_v32 = vpop.f32.mrf.mxu0 }
 0x8fb   : > { %v1631_v33 = vpop.xlane.xlu1 %1630 }
 0x8fc   : > { %2868 = vrcp.f32 %v1631_v33 }
 0x8ff   : > { %v1636_v34 = vpop.permute.xlu1 %1635 }
 0x900   : > { %v1641_v35 = vsel %vm1125_vm3, %v1636_v34, 0 }
 0x901   : > { %2575 = vmatpush3.bf16.msra.mxu0 %v1641_v35 }
 0x909   : > { %v2869_v6 = vpop.eup %2868 }
 0x90a   : > { %v1633_v37 = vmul.f32 %v2869_v6, %v2867_v23 }
 0x90c   : > { %v1634_v38 = vpack.c.bf16 %v1633_v37, %v1633_v37 }
 0x90e   : > { %2577 = vmatmul.mubr.msk.bf16.vlgmr.msra.gmra.mxu0 %vm1109_vm2, %v1634_v38 }
 0x9ce   : > { %v1677_v40 = vpop.f32.mrf.mxu0 }
 0x9cf   : > { %v1683_v41 = vpack.c.bf16 %v1677_v40, %v1677_v40 }
 0x9d0   : > { %v2578_v42 = vpop.f32.mrf.mxu0 }
 0x9d1   : > { %2585 = vmatmul.mubr.msk.bf16.vlgmr.msra.gmra.mxu1 %vm1062_vm1, %v1683_v41 }
 0x9d2   : > { %v1680_v20 = vpop.f32.mrf.mxu0 }
 0x9d4   : > { %v2579_v43 = vpop.f32.mrf.mxu0 }
 0xa91   : > { %v1737_v44 = vpop.f32.mrf.mxu1 }
 0xa92   : > { %v1743_v46 = vadd.f32 %v1737_v44, %v1572_v28 }
 0xa93   : > { %v2586_v47 = vpop.f32.mrf.mxu1 }
 0xa94   : > { %v1751_v48 = vadd.f32 %v2404_v45, %v1743_v46 }
 0xa95   : > { %v1740_v49 = vpop.f32.mrf.mxu1 }
 0xa96   : > { %1752 = vadd.xlane.f32.xlu1 %v1751_v48 }
 0xa97   : > { %v2587_v50 = vpop.f32.mrf.mxu1 }
 0xb1f   : > { %v1753_v51 = vpop.xlane.xlu1 %1752 }
 0xb20   : > { %v1755_v52 = vmul.f32 0.0078125, %v1753_v51 }
 0xb22   : > { %v1756_v53 = vsub.f32 %v1751_v48, %v1755_v52 }
 0xb24   : > { %v1757_v54 = vmul.f32 %v1756_v53, %v1756_v53 }
 0xb26   : > { %1758 = vadd.xlane.f32.xlu0 %v1757_v54 }
 0xbaf   : > { %v1759_v55 = vpop.xlane.xlu0 %1758 }
 0xbb0   : > { %v1760_v56 = vmul.f32 0.0078125, %v1759_v55 }
 0xbb2   : > { %v1761_v57 = vadd.f32 1e-05, %v1760_v56 }
 0xbb4   : > { %2870 = vrsqrt.f32 %v1761_v57 }
 0xbc1   : > { %v2871_v58 = vpop.eup %2870 }
 0xbc2   : > { %v1763_v60 = vmul.f32 %v2871_v58, %v1756_v53 }
 0xbc4   : > { %v1771_v62 = vmul.f32 %v2405_v59, %v1763_v60 }
 0xbc6   : > { %v1779_v63 = vadd.f32 %v2406_v61, %v1771_v62 }
 0xbc8   : > { %v1780_v0 = vadd.f32 %v1779_v63, %v3752_v18 }
 0xbca   : > { %1781 = vst [vmem:[#allocation2] sm:$0xff] %v1780_v0 }
 0xbcb PF: > { %v2872_v1 = vld [vmem:[%s3675_s12 + $0x38] sm:$0xff]   ;;  %v3253_v2 = vmov 0.0   ;;  %v2873_v3 = vld [vmem:[%s3675_s12 + $0x30] sm:$0xff]   ;;  %vm3254_vm4 = vmmov 0   ;;  %v2874_v18 = vld [vmem:[%s3675_s12 + $0x28] sm:$0xff]  }
 0xbcc   : > { %2588 = vmatprep.subr.bf16.mxu0 %v3253_v2  ;;  %2608 = vmatprep.subr.bf16.mxu1 %v3253_v2  ;;  %v2880_v4 = vld [vmem:[%s3681_s18 + $0x38] sm:$0xff]   ;;  %v2875_v5 = vld [vmem:[%s3675_s12 + $0x20] sm:$0xff]   ;;  %v2881_v7 = vld [vmem:[%s3681_s18 + $0x30] sm:$0xff]  }
 0xbcd   : > { %2589 = vmatpush3.bf16.msra.mxu0 %v2872_v1  ;;  %2604 = vmatprep.mubr.msk.bf16.mxu0 %vm3254_vm4, %v3253_v2  ;;  %v2876_v31 = vld [vmem:[%s3675_s12 + $0x18] sm:$0xff]   ;;  %v2882_v36 = vld [vmem:[%s3681_s18 + $0x28] sm:$0xff]   ;;  %v2877_v8 = vld [vmem:[%s3675_s12 + $0x10] sm:$0xff]  }
 0xbce   : > { %2590 = vmatprep.subr.bf16.mxu0 %v3253_v2  ;;  %2624 = vmatprep.mubr.msk.bf16.mxu1 %vm3254_vm4, %v3253_v2  ;;  %v2883_v9 = vld [vmem:[%s3681_s18 + $0x20] sm:$0xff]   ;;  %v2878_v10 = vld [vmem:[%s3675_s12 + $0x8] sm:$0xff]   ;;  %v2884_v11 = vld [vmem:[%s3681_s18 + $0x18] sm:$0xff]  }
 0xbcf   : > { %2609 = vmatpush3.bf16.msra.mxu1 %v2880_v4  ;;  %v2879_v12 = vld [vmem:[%s3675_s12] sm:$0xff]   ;;  %v2885_v14 = vld [vmem:[%s3681_s18 + $0x10] sm:$0xff]   ;;  %v2886_v16 = vld [vmem:[%s3681_s18 + $0x8] sm:$0xff]   ;;  %s4152_s12 = sld [smem:[#allocation29_spill]] }
 0xbd0   : > { %2610 = vmatprep.subr.bf16.mxu1 %v3253_v2  ;;  %v2887_v17 = vld [vmem:[%s3681_s18] sm:$0xff]   ;;  %v2407_v19 = vld [vmem:[%s776_s2] ss:$0 sm:$0xff] }
 0xbd1   : > { %2591 = vmatpush3.bf16.msra.mxu0 %v2873_v3  ;;  %v1783_v13 = vld [vmem:[#allocation2] sm:$0xff]  ;;  %v1898_v29 = vld [vmem:[#allocation3] sm:$0xff] }
 0xbd2   : > { %2592 = vmatprep.subr.bf16.mxu0 %v3253_v2  ;;  %v1784_v15 = vpack.c.bf16 %v1783_v13, %v1783_v13 }
 0xbd3   : > { %2611 = vmatpush3.bf16.msra.mxu1 %v2881_v7 }
 0xbd4   : > { %2612 = vmatprep.subr.bf16.mxu1 %v3253_v2 }
 0xbd5   : > { %2593 = vmatpush3.bf16.msra.mxu0 %v2874_v18  ;;  %p2424_p10 = scmp.ne.s32.totalorder %s4152_s12, 1 }
 0xbd6   : > { %2594 = vmatprep.subr.bf16.mxu0 %v3253_v2 }
 0xbd7   : > { %2613 = vmatpush3.bf16.msra.mxu1 %v2882_v36 }
 0xbd8   : > { %2614 = vmatprep.subr.bf16.mxu1 %v3253_v2 }
 0xbd9   : > { %2595 = vmatpush3.bf16.msra.mxu0 %v2875_v5 }
 0xbda   : > { %2596 = vmatprep.subr.bf16.mxu0 %v3253_v2 }
 0xbdb   : > { %2615 = vmatpush3.bf16.msra.mxu1 %v2883_v9 }
 0xbdc   : > { %2616 = vmatprep.subr.bf16.mxu1 %v3253_v2 }
 0xbdd   : > { %2597 = vmatpush3.bf16.msra.mxu0 %v2876_v31 }
 0xbde   : > { %2598 = vmatprep.subr.bf16.mxu0 %v3253_v2 }
 0xbdf   : > { %2617 = vmatpush3.bf16.msra.mxu1 %v2884_v11 }
 0xbe0   : > { %2618 = vmatprep.subr.bf16.mxu1 %v3253_v2 }
 0xbe1   : > { %2599 = vmatpush3.bf16.msra.mxu0 %v2877_v8 }
 0xbe2   : > { %2600 = vmatprep.subr.bf16.mxu0 %v3253_v2 }
 0xbe3   : > { %2619 = vmatpush3.bf16.msra.mxu1 %v2885_v14 }
 0xbe4   : > { %2620 = vmatprep.subr.bf16.mxu1 %v3253_v2 }
 0xbe5   : > { %2601 = vmatpush3.bf16.msra.mxu0 %v2878_v10 }
 0xbe6   : > { %2602 = vmatprep.subr.bf16.mxu0 %v3253_v2 }
 0xbe7   : > { %2621 = vmatpush3.bf16.msra.mxu1 %v2886_v16 }
 0xbe8   : > { %2622 = vmatprep.subr.bf16.mxu1 %v3253_v2 }
 0xbe9   : > { %2603 = vmatpush3.bf16.msra.mxu0 %v2879_v12 }
 0xbeb   : > { %2623 = vmatpush3.bf16.msra.mxu1 %v2887_v17 }
 0xbec   : > { %2605 = vmatmul.mubr.bf16.vlgmr.msra.gmra.mxu0 %v1784_v15 }
 0xcac   : > { %v1890_v21 = vpop.f32.mrf.mxu0 }
 0xcad   : > { %v1891_v22 = vadd.f32 %v2407_v19, %v1890_v21 }
 0xcae   : > { %v2606_v23 = vpop.f32.mrf.mxu0 }
 0xcaf   : > { %v1896_v24 = vmul.f32 0.1, %v1891_v22 }
 0xcb0   : > { %v1893_v25 = vpop.f32.mrf.mxu0 }
 0xcb1   : > { %v1897_v26 = vmax.f32 %v1891_v22, %v1896_v24 }
 0xcb2   : > { %v2607_v27 = vpop.f32.mrf.mxu0 }
 0xcb3   : > { %v1899_v28 = vpack.c.bf16 %v1897_v26, %v1897_v26 }
 0xcb5   : > { %2625 = vmatmul.mubr.bf16.vlgmr.msra.gmra.mxu1 %v1899_v28 }
 0xd75   : > { %v1998_v30 = vpop.f32.mrf.mxu1 }
 0xd76   : > { %v2004_v32 = vadd.f32 %v1998_v30, %v1898_v29 }
 0xd77   : > { %v2626_v33 = vpop.f32.mrf.mxu1  ;;  %2009 = sbr.rel (%p2424_p10) target bundleno = 3767 (0xeb7), region = 108 }
 0xd78   : > { %2005 = vst [vmem:[#allocation3] sm:$0xff] %v2004_v32 }
 0xd79   : > { %v2001_v34 = vpop.f32.mrf.mxu1 }
 0xd7b   : > { %v2627_v35 = vpop.f32.mrf.mxu1 }
 0xd7c   : > { %v2425_v37 = vld [vmem:[%s780_s15] ss:$0 sm:$0xff] }
 0xd7d   : > { %v2426_v46 = vld [vmem:[%s783_s7] ss:$0 sm:$0xff] }
 0xd7e   : > { %v2427_v48 = vld [vmem:[%s786_s25] ss:$0 sm:$0xff] }
 0xd7f   : > { %v2010_v6 = vld [vmem:[#allocation3] sm:$0xff]  ;;  %v2047_v50 = vld [vmem:[#allocation2] sm:$0xff] }
 0xd80   : > { %v2018_v38 = vadd.f32 %v2425_v37, %v2010_v6 }
 0xd82   : > { %2019 = vadd.xlane.f32.xlu0 %v2018_v38 }
 0xe0b   : > { %v2020_v39 = vpop.xlane.xlu0 %2019 }
 0xe0c   : > { %v2022_v40 = vmul.f32 0.0078125, %v2020_v39 }
 0xe0e   : > { %v2023_v41 = vsub.f32 %v2018_v38, %v2022_v40 }
 0xe10   : > { %v2024_v42 = vmul.f32 %v2023_v41, %v2023_v41 }
 0xe12   : > { %2025 = vadd.xlane.f32.xlu0 %v2024_v42 }
 0xe9b   : > { %v2026_v20 = vpop.xlane.xlu0 %2025 }
 0xe9c   : > { %v2027_v43 = vmul.f32 0.0078125, %v2026_v20 }
 0xe9e   : > { %v2028_v44 = vadd.f32 1e-05, %v2027_v43 }
 0xea0   : > { %2888 = vrsqrt.f32 %v2028_v44 }
 0xead   : > { %v2889_v45 = vpop.eup %2888 }
 0xeae   : > { %v2030_v47 = vmul.f32 %v2889_v45, %v2023_v41 }
 0xeb0   : > { %v2038_v49 = vmul.f32 %v2426_v46, %v2030_v47 }
 0xeb2   : > { %v2046_v51 = vadd.f32 %v2427_v48, %v2038_v49 }
 0xeb4   : > { %v2048_v52 = vadd.f32 %v2047_v50, %v2046_v51 }
 0xeb6   : > { %2049 = vst [vmem:[%s3730_s4] sm:$0xff] %v2048_v52 }
 0xeb7 PF: > { %s4156_s21 = sld [smem:[#allocation31_spill]]  ;;  %s2064_s3 = sshll.u32 %s3730_s4, 4  ;;  %s2065_s3 = int_to_ptr.vmem [resolvable:$true] %s2064_s3 }
 0xeb8   : > { %s4157_s23 = sld [smem:[#allocation42_spill]]  ;;  %s2051_s27 = scalar_lea.sflag [#allocation6], %s3646_s14 }
 0xeb9   : > { %s4158_s7 = sld [smem:[#allocation58_spill]]  ;;  %s3058_s22 = scalar_lea.vmem %s2065_s3, 128 }
 0xeba   : > { %p3059_p5 = scmp.ne.s32.totalorder %s2065_s3, %s3058_s22  ;;  %s3255_s25 = smov [#allocation15]  }
 0xebb   : > { %s3062_s28 = sshll.u32 %s3255_s25, 4  ;;  %s3063_s28 = int_to_ptr.vmem [resolvable:$false] %s3062_s28 }
 0xebc   : > { %s3064_s19 = scalar_lea.vmem %s3063_s28, 256  ;;  %p3065_p4 = scmp.lt.s32.totalorder %s2065_s3, %s3063_s28 }
 0xebd   : > { %s2429_s11 = sshll.u32 %s4156_s21, 7  ;;  %p3066_p0 = scmp.lt.s32.totalorder %s3064_s19, %s3058_s22 }
 0xebe   : > { %p4159_p6 = scmp.ne.s32.totalorder %s4157_s23, 0 }
 0xebf   : > { %s2062_s5 = scalar_lea.hbm %s4158_s7, %s2429_s11  ;;  %p3067_p7 = por %p3066_p0, %p3065_p4 }
 0xec0   : > { %p3060_p11 = pnand %p3059_p5, %p4159_p6 }
 0xec2   : > { %p3061_p8 = pneg %p3060_p11 }
 0xec4   : > { %p3068_p1 = pnand %p3067_p7, %p3061_p8 }
 0xec6   : > { %3071 = shalt.err (!%p3068_p1)
}
 0xec7   : > { %s3072_s24 = scalar_lea.hbm %s2062_s5, 128  ;;  %s3076_s17 = scalar_lea.hbm %s4158_s7, 256 }
 0xec8   : > { %p3073_p12 = scmp.ne.s32.totalorder %s2062_s5, %s3072_s24  ;;  %p3077_p9 = scmp.lt.s32.totalorder %s2062_s5, %s4158_s7 }
 0xec9   : > { %p3078_p3 = scmp.lt.s32.totalorder %s3076_s17, %s3072_s24 }
 0xeca   : > { %p3074_p13 = pnand %p3073_p12, %p4159_p6 }
 0xecb   : > { %p3079_p10 = por %p3078_p3, %p3077_p9 }
 0xecc   : > { %p3075_p2 = pneg %p3074_p13 }
 0xece   : > { %p3080_p5 = pnand %p3079_p10, %p3075_p2 }
 0xed0   : > { %3083 = shalt.err (!%p3080_p5)
}
 0xed1   : > { %2646 = dma.vmem_to_hbm [thread:$0]  (%p4159_p6), %s2065_s3, 128, %s2062_s5, %s2051_s27  }
 0xed2 PF: > { %s4160_s0 = sld [smem:[#allocation35_spill]] }
 0xed3   : > { %s4161_s20 = sld [smem:[#allocation26_spill]] }
 0xed4   : > { %s4162_s12 = sld [smem:[#allocation43_spill]] }
 0xed8   : > { %p2672_p11 = scmp.ge.s32.totalorder %s4160_s0, 2 }
 0xed9   : > { %s2076_s18 = sand.u32 1, %s4161_s20  }
 0xeda   : > { %p4163_p8 = scmp.ne.s32.totalorder %s4162_s12, 0  ;;  %s2077_s10 = scalar_lea.sflag [#allocation6], %s2076_s18 }
 0xedc   : > { %p2668_p4 = pnand %p2672_p11, %p4163_p8 }
 0xede   : > { %p2669_p0 = pneg %p2668_p4 }
 0xee0   : > { %3169 = dma.done.wait (%p2669_p0), %s2077_s10, 128  }
 0xee1   : > { %3171 = vsyncadd (%p2669_p0), %s2077_s10, 4294967168  ;;  %s38_s23 = sadd.s32 1, %s4160_s0   ;;  %s4165_s25 = sld [smem:[#allocation22_spill]] }
 0xee2   : > { %p3966_p7 = scmp.ge.s32.totalorder %s38_s23, 10   ;;  %s4166_s26 = sld [smem:[#allocation23_spill]] }
 0xee3   : > { %s4167_s27 = sld [smem:[#allocation44_spill]] }
 0xee4   : > { %s4168_s28 = sld [smem:[#allocation24_spill]] }
 0xee5   : > { %s4169_s29 = sld [smem:[#allocation25_spill]] }
 0xee6   : > { %s4170_s30 = sld [smem:[#allocation39_spill]] }
 0xee7   : > { %s4171_s14 = sld [smem:[#allocation27_spill]] }
 0xee8   : > { %s4172_s15 = sld [smem:[#allocation28_spill]] }
 0xee9   : > { %s4173_s16 = sld [smem:[#allocation41_spill]] }
 0xeea   : > { %s4174_s17 = sld [smem:[#allocation32_spill]] }
 0xeeb   : > { %s4175_s18 = sld [smem:[#allocation33_spill]]  ;;  %37 = sbr.rel (!%p3966_p7) target bundleno = 32 (0x20), region = 211 }
 0xeec   : > { %s4176_s19 = sld [smem:[#allocation34_spill]] }
 0xeed   : > { %s4177_s20 = sld [smem:[#allocation36_spill]] }
 0xeee   : > { %s4178_s21 = sld [smem:[#allocation37_spill]] }
 0xeef   : > { %s4179_s22 = sld [smem:[#allocation38_spill]] }
 0xef0   :  { %2082 = vsyncpa [#allocation5], 1 }
 0xef1   :  { %2084 = vsyncpa [#allocation5 + $0x1], 1 }
 0xef2   :  { %2085 = vsyncpa [#allocation8], 1 }
 0xef3   :  { %2087 = vsyncpa [#allocation8 + $0x1], 1 }
 0xef4   :  { %2088 = vsyncpa [#allocation11], 1 }
 0xef5   :  { %2090 = vsyncpa [#allocation11 + $0x1], 1 }
 0xef6   :  { %2091 = vsyncpa [#allocation14], 1 }
 0xef7   :  { %2093 = vsyncpa [#allocation14 + $0x1], 1 }
 0xef8   :  { %2094 = vsyncpa [#allocation6], 1 }
 0xef9   :  { %2096 = vsyncpa [#allocation6 + $0x1], 1 }

</bundles_post_ra>
